<compile_context>
chip_gen: v7x
topology: tpu7x:2x2x1
jax: 0.10.0
libtpu: 0.0.40
codegen_flags: <defaults>
</compile_context>

<pallas_src>
import functools

import jax
import jax.numpy as jnp
import numpy as np
from jax import lax
from jax.experimental import pallas as pl
from jax.experimental.pallas import tpu as pltpu


def _bilstm_kernel(lens_ref, x_f_ref, x_b_ref, wih_ref, b_ref, whh_ref,
                   out_f_ref, out_b_ref, h_sc, c_sc, gin_sc, mask_sc,
                   *, H, TT, D):
    """One grid step: TT forward steps of chunk g and TT backward steps of
    chunk (n-1-g), interleaved in a fused gate-major layout.

    lens_ref:   (Bp, 1)          int32  sequence lengths
    x_f_ref:    (TT, Bp, D)      f32    raw input, chunk g (time ascending)
    x_b_ref:    (TT, Bp, D)      f32    raw input, chunk n-1-g, already
                                        time-REVERSED (row tt = bwd step tt)
    wih_ref:    (2D, 8H)         f32    block-diag gate-major input weights
    b_ref:      (1, 8H)          f32    gate-major combined bias (b_ih + b_hh)
    whh_ref:    (2H, 8H)         f32    block-diag gate-major recurrent weights
    out_f_ref:  (1, Bp, TT*H)    f32    forward hidden states, chunk g
    out_b_ref:  (1, Bp, TT*H)    f32    backward hidden states, chunk n-1-g
    h_sc, c_sc: (Bp, 2H)         f32    persistent state, fwd lanes [0:H)
    gin_sc:     (TT, Bp, 8H)     f32    per-chunk input-projected gates
    mask_sc:    (TT, Bp, 2H)     f32    per-chunk validity masks (0/1)
    """
    g = pl.program_id(0)
    n = pl.num_programs(0)
    Bp = h_sc.shape[0]

    @pl.when(g == 0)
    def _():
        h_sc[...] = jnp.zeros_like(h_sc)
        c_sc[...] = jnp.zeros_like(c_sc)

    # ---- fused per-chunk input projection (one MXU pass, bias folded) ------
    wih = wih_ref[...]                                        # (2D, 8H)
    xf2 = x_f_ref[...].reshape(TT * Bp, D)
    xb2 = x_b_ref[...].reshape(TT * Bp, D)
    gin2 = (jnp.dot(xf2, wih[:D], preferred_element_type=jnp.float32)
            + jnp.dot(xb2, wih[D:], preferred_element_type=jnp.float32)
            + b_ref[...])                                     # (TT*Bp, 8H)
    gin_sc[...] = gin2.reshape(TT, Bp, 8 * H)

    # ---- per-chunk validity masks (fwd lanes [0:H), bwd lanes [H:2H)) ------
    t0_f = g * TT
    t0_b = (n - 1 - g) * TT
    tt_ids = lax.broadcasted_iota(jnp.int32, (TT, Bp, 2 * H), 0)
    lane_ids = lax.broadcasted_iota(jnp.int32, (TT, Bp, 2 * H), 2)
    t_vec = jnp.where(lane_ids < H, t0_f + tt_ids, t0_b + (TT - 1 - tt_ids))
    lens = lens_ref[...]                                      # (Bp, 1)
    mask_sc[...] = (t_vec < lens[None, :, :]).astype(jnp.float32)

    whh = whh_ref[...]                                        # (2H, 8H)
    h = h_sc[...]                                             # (Bp, 2H)
    c = c_sc[...]                                             # (Bp, 2H)

    H2 = 2 * H

    def sig(v):                       # sigmoid(x) = 0.5*(tanh(0.5x)+1): 1 EUP push
        return 0.5 * (jnp.tanh(0.5 * v) + 1.0)

    # Statically unrolled recurrence: every index below is a Python constant,
    # so all gin/mask loads and output stores are static slices.
    for tt in range(TT):
        gates = gin_sc[tt] + jnp.dot(h, whh,
                                     preferred_element_type=jnp.float32)
        i_s = sig(gates[:, 0 * H2:1 * H2])                    # (Bp, 2H)
        f_s = sig(gates[:, 1 * H2:2 * H2])
        g_s = jnp.tanh(gates[:, 2 * H2:3 * H2])
        o_s = sig(gates[:, 3 * H2:4 * H2])
        c_new = f_s * c + i_s * g_s
        h_new = o_s * jnp.tanh(c_new)

        m = mask_sc[tt]                                       # (Bp, 2H) 0/1
        hm = m * h_new                                        # zero past len
        out_f_ref[0, :, tt * H:(tt + 1) * H] = hm[:, :H]
        out_b_ref[0, :, (TT - 1 - tt) * H:(TT - tt) * H] = hm[:, H:]

        h = h + m * (h_new - h)                               # freeze past len
        c = c + m * (c_new - c)

    h_sc[...] = h
    c_sc[...] = c


def _vmem_cap_bytes():
    try:
        return int(pltpu.get_tpu_info().vmem_capacity_bytes)
    except Exception:
        return 64 * 1024 * 1024     # conservative fallback (v7x per-core VMEM)


@functools.partial(jax.jit, static_argnames=("time_chunk",))
def bilstm_pallas(x, x_len, wih_f, whh_f, b_f, wih_b, whh_b, b_b, *,
                  time_chunk=32):
    """x: (B, T, D_in) batch-first. Returns (B, T, 2*H) like the PyTorch module."""
    B, T, D = x.shape
    H = whh_f.shape[0]
    TT = max(1, min(int(time_chunk), T))
    Tp = pl.cdiv(T, TT) * TT
    Bp = pl.cdiv(B, 8) * 8
    n_chunks = Tp // TT

    x = x.astype(jnp.float32)
    x_tm = jnp.transpose(x, (1, 0, 2))                        # (T, B, D) time-major
    x_tm = jnp.pad(x_tm, ((0, Tp - T), (0, Bp - B), (0, 0)))  # (Tp, Bp, D)
    x_rev = jnp.flip(x_tm, axis=0)                            # for backward dir
    lens = jnp.pad(x_len.astype(jnp.int32), (0, Bp - B)).reshape(Bp, 1)

    # ---- gate-major, direction-interleaved parameter packing ---------------
    # column order: [i_f|i_b | f_f|f_b | g_f|g_b | o_f|o_b], each H wide
    def place(w, dir_idx):
        w = w.astype(jnp.float32)
        R = w.shape[0]
        z = jnp.zeros((R, 4, 2, H), jnp.float32)
        z = z.at[:, :, dir_idx, :].set(w.reshape(R, 4, H))
        return z.reshape(R, 8 * H)

    wih_bd = jnp.concatenate([place(wih_f, 0), place(wih_b, 1)], axis=0)  # (2D, 8H)
    whh_bd = jnp.concatenate([place(whh_f, 0), place(whh_b, 1)], axis=0)  # (2H, 8H)
    b_bd = place(b_f, 0) + place(b_b, 1)                                  # (1, 8H)

    # ---- VMEM budget (clamped to the chip's physical capacity) -------------
    est = 4 * (2 * 2 * TT * Bp * D                 # x_f + x_b blocks, 2-deep
               + 2 * 2 * Bp * TT * H               # out_f + out_b blocks, 2-deep
               + 2 * D * 8 * H + 8 * H + 2 * H * 8 * H + Bp   # weights/bias/lens
               + 2 * Bp * 2 * H                    # h/c scratch
               + TT * Bp * 8 * H + TT * Bp * 2 * H)  # gin + mask scratch
    cap = _vmem_cap_bytes()
    vmem_limit = int(min(cap * 3 // 4, max(8 * 1024 * 1024, 4 * est)))

    kernel = functools.partial(_bilstm_kernel, H=H, TT=TT, D=D)

    out_f, out_b = pl.pallas_call(
        kernel,
        grid=(n_chunks,),
        in_specs=[
            pl.BlockSpec((Bp, 1), lambda g: (0, 0)),                      # lens
            pl.BlockSpec((TT, Bp, D), lambda g: (g, 0, 0)),               # x fwd
            pl.BlockSpec((TT, Bp, D), lambda g: (g, 0, 0)),               # x rev (bwd)
            pl.BlockSpec((2 * D, 8 * H), lambda g: (0, 0)),               # W_ih
            pl.BlockSpec((1, 8 * H), lambda g: (0, 0)),                   # bias
            pl.BlockSpec((2 * H, 8 * H), lambda g: (0, 0)),               # W_hh
        ],
        out_specs=[
            pl.BlockSpec((1, Bp, TT * H), lambda g: (g, 0, 0)),           # out fwd
            pl.BlockSpec((1, Bp, TT * H), lambda g: (n_chunks - 1 - g, 0, 0)),
        ],
        out_shape=(jax.ShapeDtypeStruct((n_chunks, Bp, TT * H), jnp.float32),
                   jax.ShapeDtypeStruct((n_chunks, Bp, TT * H), jnp.float32)),
        scratch_shapes=[pltpu.VMEM((Bp, 2 * H), jnp.float32),             # h
                        pltpu.VMEM((Bp, 2 * H), jnp.float32),             # c
                        pltpu.VMEM((TT, Bp, 8 * H), jnp.float32),         # gin
                        pltpu.VMEM((TT, Bp, 2 * H), jnp.float32)],        # mask
        compiler_params=pltpu.CompilerParams(
            dimension_semantics=("arbitrary",),
            vmem_limit_bytes=vmem_limit),
    )(lens, x_tm, x_rev, wih_bd, b_bd, whh_bd)

    # (n_chunks, Bp, TT*H) -> (Bp, Tp, H) -> (B, T, H), then concat directions
    def unfold(o):
        o = o.reshape(n_chunks, Bp, TT, H)
        o = jnp.transpose(o, (1, 0, 2, 3)).reshape(Bp, Tp, H)
        return o[:B, :T]

    return jnp.concatenate([unfold(out_f), unfold(out_b)], axis=-1)  # (B, T, 2H)


def init_params(key, d_in, d_out):
    """Deterministic LSTM parameters, PyTorch-style U(-1/sqrt(H), 1/sqrt(H))."""
    H = d_out
    bound = 1.0 / float(np.sqrt(H))
    keys = jax.random.split(key, 12)

    def u(k, shape):
        return jax.random.uniform(k, shape, jnp.float32, -bound, bound)

    return dict(
        wih_f=u(keys[0], (d_in, 4 * H)),
        whh_f=u(keys[1], (H, 4 * H)),
        b_f=u(keys[2], (1, 4 * H)) + u(keys[3], (1, 4 * H)),   # b_ih + b_hh
        wih_b=u(keys[4], (d_in, 4 * H)),
        whh_b=u(keys[5], (H, 4 * H)),
        b_b=u(keys[6], (1, 4 * H)) + u(keys[7], (1, 4 * H)),
    )


def ref_bilstm(x, x_len, p):
    """Pure NumPy reference with exact packed-sequence semantics."""
    x = np.asarray(x, np.float32)
    lens = np.asarray(x_len)
    B, T, _ = x.shape
    H = np.asarray(p["whh_f"]).shape[0]
    out = np.zeros((B, T, 2 * H), np.float32)

    def cell(x_t, h, c, wih, whh, b):
        g = x_t @ wih + h @ whh + b[0]
        i = 1.0 / (1.0 + np.exp(-g[0 * H:1 * H]))
        f = 1.0 / (1.0 + np.exp(-g[1 * H:2 * H]))
        gg = np.tanh(g[2 * H:3 * H])
        o = 1.0 / (1.0 + np.exp(-g[3 * H:4 * H]))
        c = f * c + i * gg
        h = o * np.tanh(c)
        return h, c

    wih_f, whh_f, b_f = map(np.asarray, (p["wih_f"], p["whh_f"], p["b_f"]))
    wih_b, whh_b, b_b = map(np.asarray, (p["wih_b"], p["whh_b"], p["b_b"]))

    for bi in range(B):
        L = int(lens[bi])
        h = np.zeros(H, np.float32); c = np.zeros(H, np.float32)
        for t in range(L):
            h, c = cell(x[bi, t], h, c, wih_f, whh_f, b_f)
            out[bi, t, :H] = h
        h = np.zeros(H, np.float32); c = np.zeros(H, np.float32)
        for t in range(L - 1, -1, -1):
            h, c = cell(x[bi, t], h, c, wih_b, whh_b, b_b)
            out[bi, t, H:] = h
    return out


if __name__ == "__main__":
    B, T, D_IN, D_OUT = 4, 8, 16, 32

    key = jax.random.PRNGKey(0)
    k_x, k_p = jax.random.split(key)

    x = jax.random.normal(k_x, (B, T, D_IN), jnp.float32)
    x_len = jnp.array([8, 6, 3, 5], dtype=jnp.int32)
    params = init_params(k_p, D_IN, D_OUT)

    out = bilstm_pallas(x, x_len,
                        params["wih_f"], params["whh_f"], params["b_f"],
                        params["wih_b"], params["whh_b"], params["b_b"])
    out = jax.block_until_ready(out)

    ref = ref_bilstm(x, x_len, params)
    assert out.shape == (B, T, 2 * D_OUT), out.shape
    np.testing.assert_allclose(np.asarray(out), ref, atol=5e-4, rtol=5e-4)

    print("KERNEL_OK")
</pallas_src>

<mosaic_0001>
module attributes {stable_mosaic.version = 11 : i64} {
  func.func @_bilstm_kernel(%arg0: i32, %arg1: memref<8x1xi32, #tpu.memory_space<vmem>>, %arg2: memref<8x8x16xf32, #tpu.memory_space<vmem>>, %arg3: memref<8x8x16xf32, #tpu.memory_space<vmem>>, %arg4: memref<32x256xf32, #tpu.memory_space<vmem>>, %arg5: memref<1x256xf32, #tpu.memory_space<vmem>>, %arg6: memref<64x256xf32, #tpu.memory_space<vmem>>, %arg7: memref<1x8x256xf32, #tpu.memory_space<vmem>>, %arg8: memref<1x8x256xf32, #tpu.memory_space<vmem>>, %arg9: memref<8x64xf32, #tpu.memory_space<vmem>>, %arg10: memref<8x64xf32, #tpu.memory_space<vmem>>, %arg11: memref<8x8x256xf32, #tpu.memory_space<vmem>>, %arg12: memref<8x8x64xf32, #tpu.memory_space<vmem>>) attributes {dimension_semantics = [#tpu.dimension_semantics<arbitrary>], iteration_bounds = array<i64: 1>, scalar_prefetch = 0 : i64, scratch_operands = 4 : i64, tpu.core_type = #tpu.core_type<tc>, window_params = [{pipeline_mode = #tpu.pipeline_mode<synchronous>, transform_indices = @transform_0, window_bounds = array<i64: 8, 1>}, {transform_indices = @transform_1, window_bounds = array<i64: 8, 8, 16>}, {transform_indices = @transform_2, window_bounds = array<i64: 8, 8, 16>}, {pipeline_mode = #tpu.pipeline_mode<synchronous>, transform_indices = @transform_3, window_bounds = array<i64: 32, 256>}, {pipeline_mode = #tpu.pipeline_mode<synchronous>, transform_indices = @transform_4, window_bounds = array<i64: 1, 256>}, {pipeline_mode = #tpu.pipeline_mode<synchronous>, transform_indices = @transform_5, window_bounds = array<i64: 64, 256>}, {transform_indices = @transform_6, window_bounds = array<i64: 1, 8, 256>}, {transform_indices = @transform_7, window_bounds = array<i64: 1, 8, 256>}]} {
    %c0_i32 = arith.constant 0 : i32
    %0 = arith.cmpi eq, %arg0, %c0_i32 : i32
    %1 = arith.extui %0 : i1 to i32
    %c0_i32_0 = arith.constant 0 : i32
    %2 = arith.cmpi ne, %1, %c0_i32_0 : i32
    scf.if %2 {
      %cst_193 = arith.constant 0.000000e+00 : f32
      %460 = vector.broadcast %cst_193 : f32 to vector<8x64xf32>
      %c0_194 = arith.constant 0 : index
      %c0_195 = arith.constant 0 : index
      %461 = vector.load %arg9[%c0_194, %c0_195] : memref<8x64xf32, #tpu.memory_space<vmem>>, vector<8x64xf32>
      tpu.vector_store %arg9[%c0_194, %c0_195], %460 {strides = array<i32>} : memref<8x64xf32, #tpu.memory_space<vmem>>, vector<8x64xf32>,
      %cst_196 = arith.constant 0.000000e+00 : f32
      %462 = vector.broadcast %cst_196 : f32 to vector<8x64xf32>
      %c0_197 = arith.constant 0 : index
      %c0_198 = arith.constant 0 : index
      %463 = vector.load %arg10[%c0_197, %c0_198] : memref<8x64xf32, #tpu.memory_space<vmem>>, vector<8x64xf32>
      tpu.vector_store %arg10[%c0_197, %c0_198], %462 {strides = array<i32>} : memref<8x64xf32, #tpu.memory_space<vmem>>, vector<8x64xf32>,
    } else {
    }
    %c0 = arith.constant 0 : index
    %c0_1 = arith.constant 0 : index
    %3 = vector.load %arg4[%c0, %c0_1] : memref<32x256xf32, #tpu.memory_space<vmem>>, vector<32x256xf32>
    %c0_2 = arith.constant 0 : index
    %c0_3 = arith.constant 0 : index
    %c0_4 = arith.constant 0 : index
    %4 = vector.load %arg2[%c0_2, %c0_3, %c0_4] : memref<8x8x16xf32, #tpu.memory_space<vmem>>, vector<8x8x16xf32>
    %5 = vector.shape_cast %4 : vector<8x8x16xf32> to vector<64x16xf32>
    %c0_5 = arith.constant 0 : index
    %c0_6 = arith.constant 0 : index
    %c0_7 = arith.constant 0 : index
    %6 = vector.load %arg3[%c0_5, %c0_6, %c0_7] : memref<8x8x16xf32, #tpu.memory_space<vmem>>, vector<8x8x16xf32>
    %7 = vector.shape_cast %6 : vector<8x8x16xf32> to vector<64x16xf32>
    %8 = vector.extract_strided_slice %3 {offsets = [0, 0], sizes = [16, 256], strides = [1, 1]} : vector<32x256xf32> to vector<16x256xf32>
    %cst = arith.constant dense<0.000000e+00> : vector<64x256xf32>
    %9 = tpu.matmul %5, %8, %cst {dimension_numbers = #tpu.dot_dimension_numbers<[1], [0], [0], [1], [0, 0, 1, 1], [], []>} : vector<64x16xf32>, vector<16x256xf32>, vector<64x256xf32> -> vector<64x256xf32>
    %10 = vector.extract_strided_slice %3 {offsets = [16, 0], sizes = [16, 256], strides = [1, 1]} : vector<32x256xf32> to vector<16x256xf32>
    %cst_8 = arith.constant dense<0.000000e+00> : vector<64x256xf32>
    %11 = tpu.matmul %7, %10, %cst_8 {dimension_numbers = #tpu.dot_dimension_numbers<[1], [0], [0], [1], [0, 0, 1, 1], [], []>} : vector<64x16xf32>, vector<16x256xf32>, vector<64x256xf32> -> vector<64x256xf32>
    %12 = arith.addf %9, %11 : vector<64x256xf32>
    %c0_9 = arith.constant 0 : index
    %c0_10 = arith.constant 0 : index
    %13 = vector.load %arg5[%c0_9, %c0_10] : memref<1x256xf32, #tpu.memory_space<vmem>>, vector<1x256xf32>
    %14 = vector.broadcast %13 : vector<1x256xf32> to vector<64x256xf32>
    %15 = arith.addf %12, %14 : vector<64x256xf32>
    %16 = vector.shape_cast %15 : vector<64x256xf32> to vector<8x8x256xf32>
    %c0_11 = arith.constant 0 : index
    %c0_12 = arith.constant 0 : index
    %c0_13 = arith.constant 0 : index
    %17 = vector.load %arg11[%c0_11, %c0_12, %c0_13] : memref<8x8x256xf32, #tpu.memory_space<vmem>>, vector<8x8x256xf32>
    tpu.vector_store %arg11[%c0_11, %c0_12, %c0_13], %16 {strides = array<i32>} : memref<8x8x256xf32, #tpu.memory_space<vmem>>, vector<8x8x256xf32>,
    %c8_i32 = arith.constant 8 : i32
    %18 = arith.muli %arg0, %c8_i32 : i32
    %c0_i32_14 = arith.constant 0 : i32
    %19 = arith.subi %c0_i32_14, %arg0 : i32
    %c8_i32_15 = arith.constant 8 : i32
    %20 = arith.muli %19, %c8_i32_15 : i32
    %21 = tpu.iota {dimensions = array<i32: 0>} : vector<8x8x64xi32>
    %22 = tpu.iota {dimensions = array<i32: 2>} : vector<8x8x64xi32>
    %c32_i32 = arith.constant 32 : i32
    %23 = vector.broadcast %c32_i32 : i32 to vector<8x8x64xi32>
    %24 = arith.cmpi slt, %22, %23 : vector<8x8x64xi32>
    %25 = vector.broadcast %18 : i32 to vector<8x8x64xi32>
    %26 = arith.addi %25, %21 : vector<8x8x64xi32>
    %c7_i32 = arith.constant 7 : i32
    %27 = vector.broadcast %c7_i32 : i32 to vector<8x8x64xi32>
    %28 = arith.subi %27, %21 : vector<8x8x64xi32>
    %29 = vector.broadcast %20 : i32 to vector<8x8x64xi32>
    %30 = arith.addi %29, %28 : vector<8x8x64xi32>
    %31 = arith.select %24, %26, %30 : vector<8x8x64xi1>, vector<8x8x64xi32>
    %c0_16 = arith.constant 0 : index
    %c0_17 = arith.constant 0 : index
    %32 = vector.load %arg1[%c0_16, %c0_17] : memref<8x1xi32, #tpu.memory_space<vmem>>, vector<8x1xi32>
    %33 = vector.shape_cast %32 : vector<8x1xi32> to vector<1x8x1xi32>
    %34 = vector.broadcast %33 : vector<1x8x1xi32> to vector<8x8x64xi32>
    %35 = arith.cmpi slt, %31, %34 : vector<8x8x64xi32>
    %36 = arith.extui %35 : vector<8x8x64xi1> to vector<8x8x64xi32>
    %37 = arith.sitofp %36 : vector<8x8x64xi32> to vector<8x8x64xf32>
    %c0_18 = arith.constant 0 : index
    %c0_19 = arith.constant 0 : index
    %c0_20 = arith.constant 0 : index
    %38 = vector.load %arg12[%c0_18, %c0_19, %c0_20] : memref<8x8x64xf32, #tpu.memory_space<vmem>>, vector<8x8x64xf32>
    tpu.vector_store %arg12[%c0_18, %c0_19, %c0_20], %37 {strides = array<i32>} : memref<8x8x64xf32, #tpu.memory_space<vmem>>, vector<8x8x64xf32>,
    %c0_21 = arith.constant 0 : index
    %c0_22 = arith.constant 0 : index
    %39 = vector.load %arg6[%c0_21, %c0_22] : memref<64x256xf32, #tpu.memory_space<vmem>>, vector<64x256xf32>
    %c0_23 = arith.constant 0 : index
    %c0_24 = arith.constant 0 : index
    %40 = vector.load %arg9[%c0_23, %c0_24] : memref<8x64xf32, #tpu.memory_space<vmem>>, vector<8x64xf32>
    %c0_25 = arith.constant 0 : index
    %c0_26 = arith.constant 0 : index
    %41 = vector.load %arg10[%c0_25, %c0_26] : memref<8x64xf32, #tpu.memory_space<vmem>>, vector<8x64xf32>
    %c0_27 = arith.constant 0 : index
    %c0_28 = arith.constant 0 : index
    %c0_29 = arith.constant 0 : index
    %42 = vector.load %arg11[%c0_27, %c0_28, %c0_29] : memref<8x8x256xf32, #tpu.memory_space<vmem>>, vector<1x8x256xf32>
    %43 = vector.shape_cast %42 : vector<1x8x256xf32> to vector<8x256xf32>
    %cst_30 = arith.constant dense<0.000000e+00> : vector<8x256xf32>
    %44 = tpu.matmul %40, %39, %cst_30 {dimension_numbers = #tpu.dot_dimension_numbers<[1], [0], [0], [1], [0, 0, 1, 1], [], []>} : vector<8x64xf32>, vector<64x256xf32>, vector<8x256xf32> -> vector<8x256xf32>
    %45 = arith.addf %43, %44 : vector<8x256xf32>
    %46 = vector.extract_strided_slice %45 {offsets = [0, 0], sizes = [8, 64], strides = [1, 1]} : vector<8x256xf32> to vector<8x64xf32>
    %cst_31 = arith.constant 5.000000e-01 : f32
    %47 = vector.broadcast %cst_31 : f32 to vector<8x64xf32>
    %48 = arith.mulf %47, %46 : vector<8x64xf32>
    %49 = math.tanh %48 : vector<8x64xf32>
    %cst_32 = arith.constant 1.000000e+00 : f32
    %50 = vector.broadcast %cst_32 : f32 to vector<8x64xf32>
    %51 = arith.addf %49, %50 : vector<8x64xf32>
    %cst_33 = arith.constant 5.000000e-01 : f32
    %52 = vector.broadcast %cst_33 : f32 to vector<8x64xf32>
    %53 = arith.mulf %52, %51 : vector<8x64xf32>
    %54 = vector.extract_strided_slice %45 {offsets = [0, 64], sizes = [8, 64], strides = [1, 1]} : vector<8x256xf32> to vector<8x64xf32>
    %cst_34 = arith.constant 5.000000e-01 : f32
    %55 = vector.broadcast %cst_34 : f32 to vector<8x64xf32>
    %56 = arith.mulf %55, %54 : vector<8x64xf32>
    %57 = math.tanh %56 : vector<8x64xf32>
    %cst_35 = arith.constant 1.000000e+00 : f32
    %58 = vector.broadcast %cst_35 : f32 to vector<8x64xf32>
    %59 = arith.addf %57, %58 : vector<8x64xf32>
    %cst_36 = arith.constant 5.000000e-01 : f32
    %60 = vector.broadcast %cst_36 : f32 to vector<8x64xf32>
    %61 = arith.mulf %60, %59 : vector<8x64xf32>
    %62 = vector.extract_strided_slice %45 {offsets = [0, 128], sizes = [8, 64], strides = [1, 1]} : vector<8x256xf32> to vector<8x64xf32>
    %63 = math.tanh %62 : vector<8x64xf32>
    %64 = vector.extract_strided_slice %45 {offsets = [0, 192], sizes = [8, 64], strides = [1, 1]} : vector<8x256xf32> to vector<8x64xf32>
    %cst_37 = arith.constant 5.000000e-01 : f32
    %65 = vector.broadcast %cst_37 : f32 to vector<8x64xf32>
    %66 = arith.mulf %65, %64 : vector<8x64xf32>
    %67 = math.tanh %66 : vector<8x64xf32>
    %cst_38 = arith.constant 1.000000e+00 : f32
    %68 = vector.broadcast %cst_38 : f32 to vector<8x64xf32>
    %69 = arith.addf %67, %68 : vector<8x64xf32>
    %cst_39 = arith.constant 5.000000e-01 : f32
    %70 = vector.broadcast %cst_39 : f32 to vector<8x64xf32>
    %71 = arith.mulf %70, %69 : vector<8x64xf32>
    %72 = arith.mulf %61, %41 : vector<8x64xf32>
    %73 = arith.mulf %53, %63 : vector<8x64xf32>
    %74 = arith.addf %72, %73 : vector<8x64xf32>
    %75 = math.tanh %74 : vector<8x64xf32>
    %76 = arith.mulf %71, %75 : vector<8x64xf32>
    %c0_40 = arith.constant 0 : index
    %c0_41 = arith.constant 0 : index
    %c0_42 = arith.constant 0 : index
    %77 = vector.load %arg12[%c0_40, %c0_41, %c0_42] : memref<8x8x64xf32, #tpu.memory_space<vmem>>, vector<1x8x64xf32>
    %78 = vector.shape_cast %77 : vector<1x8x64xf32> to vector<8x64xf32>
    %79 = arith.mulf %78, %76 : vector<8x64xf32>
    %80 = vector.extract_strided_slice %79 {offsets = [0, 0], sizes = [8, 32], strides = [1, 1]} : vector<8x64xf32> to vector<8x32xf32>
    %c0_43 = arith.constant 0 : index
    %c0_44 = arith.constant 0 : index
    %c0_45 = arith.constant 0 : index
    %81 = vector.load %arg7[%c0_43, %c0_44, %c0_45] : memref<1x8x256xf32, #tpu.memory_space<vmem>>, vector<1x8x32xf32>
    %82 = vector.shape_cast %81 : vector<1x8x32xf32> to vector<8x32xf32>
    %83 = vector.shape_cast %80 : vector<8x32xf32> to vector<1x8x32xf32>
    tpu.vector_store %arg7[%c0_43, %c0_44, %c0_45], %83 {strides = array<i32>} : memref<1x8x256xf32, #tpu.memory_space<vmem>>, vector<1x8x32xf32>,
    %84 = vector.extract_strided_slice %79 {offsets = [0, 32], sizes = [8, 32], strides = [1, 1]} : vector<8x64xf32> to vector<8x32xf32>
    %c0_46 = arith.constant 0 : index
    %c0_47 = arith.constant 0 : index
    %c224 = arith.constant 224 : index
    %85 = vector.load %arg8[%c0_46, %c0_47, %c224] : memref<1x8x256xf32, #tpu.memory_space<vmem>>, vector<1x8x32xf32>
    %86 = vector.shape_cast %85 : vector<1x8x32xf32> to vector<8x32xf32>
    %87 = vector.shape_cast %84 : vector<8x32xf32> to vector<1x8x32xf32>
    tpu.vector_store %arg8[%c0_46, %c0_47, %c224], %87 {strides = array<i32>} : memref<1x8x256xf32, #tpu.memory_space<vmem>>, vector<1x8x32xf32>,
    %88 = arith.subf %76, %40 : vector<8x64xf32>
    %89 = arith.mulf %78, %88 : vector<8x64xf32>
    %90 = arith.addf %40, %89 : vector<8x64xf32>
    %91 = arith.subf %74, %41 : vector<8x64xf32>
    %92 = arith.mulf %78, %91 : vector<8x64xf32>
    %93 = arith.addf %41, %92 : vector<8x64xf32>
    %c1 = arith.constant 1 : index
    %c0_48 = arith.constant 0 : index
    %c0_49 = arith.constant 0 : index
    %94 = vector.load %arg11[%c1, %c0_48, %c0_49] : memref<8x8x256xf32, #tpu.memory_space<vmem>>, vector<1x8x256xf32>
    %95 = vector.shape_cast %94 : vector<1x8x256xf32> to vector<8x256xf32>
    %cst_50 = arith.constant dense<0.000000e+00> : vector<8x256xf32>
    %96 = tpu.matmul %90, %39, %cst_50 {dimension_numbers = #tpu.dot_dimension_numbers<[1], [0], [0], [1], [0, 0, 1, 1], [], []>} : vector<8x64xf32>, vector<64x256xf32>, vector<8x256xf32> -> vector<8x256xf32>
    %97 = arith.addf %95, %96 : vector<8x256xf32>
    %98 = vector.extract_strided_slice %97 {offsets = [0, 0], sizes = [8, 64], strides = [1, 1]} : vector<8x256xf32> to vector<8x64xf32>
    %cst_51 = arith.constant 5.000000e-01 : f32
    %99 = vector.broadcast %cst_51 : f32 to vector<8x64xf32>
    %100 = arith.mulf %99, %98 : vector<8x64xf32>
    %101 = math.tanh %100 : vector<8x64xf32>
    %cst_52 = arith.constant 1.000000e+00 : f32
    %102 = vector.broadcast %cst_52 : f32 to vector<8x64xf32>
    %103 = arith.addf %101, %102 : vector<8x64xf32>
    %cst_53 = arith.constant 5.000000e-01 : f32
    %104 = vector.broadcast %cst_53 : f32 to vector<8x64xf32>
    %105 = arith.mulf %104, %103 : vector<8x64xf32>
    %106 = vector.extract_strided_slice %97 {offsets = [0, 64], sizes = [8, 64], strides = [1, 1]} : vector<8x256xf32> to vector<8x64xf32>
    %cst_54 = arith.constant 5.000000e-01 : f32
    %107 = vector.broadcast %cst_54 : f32 to vector<8x64xf32>
    %108 = arith.mulf %107, %106 : vector<8x64xf32>
    %109 = math.tanh %108 : vector<8x64xf32>
    %cst_55 = arith.constant 1.000000e+00 : f32
    %110 = vector.broadcast %cst_55 : f32 to vector<8x64xf32>
    %111 = arith.addf %109, %110 : vector<8x64xf32>
    %cst_56 = arith.constant 5.000000e-01 : f32
    %112 = vector.broadcast %cst_56 : f32 to vector<8x64xf32>
    %113 = arith.mulf %112, %111 : vector<8x64xf32>
    %114 = vector.extract_strided_slice %97 {offsets = [0, 128], sizes = [8, 64], strides = [1, 1]} : vector<8x256xf32> to vector<8x64xf32>
    %115 = math.tanh %114 : vector<8x64xf32>
    %116 = vector.extract_strided_slice %97 {offsets = [0, 192], sizes = [8, 64], strides = [1, 1]} : vector<8x256xf32> to vector<8x64xf32>
    %cst_57 = arith.constant 5.000000e-01 : f32
    %117 = vector.broadcast %cst_57 : f32 to vector<8x64xf32>
    %118 = arith.mulf %117, %116 : vector<8x64xf32>
    %119 = math.tanh %118 : vector<8x64xf32>
    %cst_58 = arith.constant 1.000000e+00 : f32
    %120 = vector.broadcast %cst_58 : f32 to vector<8x64xf32>
    %121 = arith.addf %119, %120 : vector<8x64xf32>
    %cst_59 = arith.constant 5.000000e-01 : f32
    %122 = vector.broadcast %cst_59 : f32 to vector<8x64xf32>
    %123 = arith.mulf %122, %121 : vector<8x64xf32>
    %124 = arith.mulf %113, %93 : vector<8x64xf32>
    %125 = arith.mulf %105, %115 : vector<8x64xf32>
    %126 = arith.addf %124, %125 : vector<8x64xf32>
    %127 = math.tanh %126 : vector<8x64xf32>
    %128 = arith.mulf %123, %127 : vector<8x64xf32>
    %c1_60 = arith.constant 1 : index
    %c0_61 = arith.constant 0 : index
    %c0_62 = arith.constant 0 : index
    %129 = vector.load %arg12[%c1_60, %c0_61, %c0_62] : memref<8x8x64xf32, #tpu.memory_space<vmem>>, vector<1x8x64xf32>
    %130 = vector.shape_cast %129 : vector<1x8x64xf32> to vector<8x64xf32>
    %131 = arith.mulf %130, %128 : vector<8x64xf32>
    %132 = vector.extract_strided_slice %131 {offsets = [0, 0], sizes = [8, 32], strides = [1, 1]} : vector<8x64xf32> to vector<8x32xf32>
    %c0_63 = arith.constant 0 : index
    %c0_64 = arith.constant 0 : index
    %c32 = arith.constant 32 : index
    %133 = vector.load %arg7[%c0_63, %c0_64, %c32] : memref<1x8x256xf32, #tpu.memory_space<vmem>>, vector<1x8x32xf32>
    %134 = vector.shape_cast %133 : vector<1x8x32xf32> to vector<8x32xf32>
    %135 = vector.shape_cast %132 : vector<8x32xf32> to vector<1x8x32xf32>
    tpu.vector_store %arg7[%c0_63, %c0_64, %c32], %135 {strides = array<i32>} : memref<1x8x256xf32, #tpu.memory_space<vmem>>, vector<1x8x32xf32>,
    %136 = vector.extract_strided_slice %131 {offsets = [0, 32], sizes = [8, 32], strides = [1, 1]} : vector<8x64xf32> to vector<8x32xf32>
    %c0_65 = arith.constant 0 : index
    %c0_66 = arith.constant 0 : index
    %c192 = arith.constant 192 : index
    %137 = vector.load %arg8[%c0_65, %c0_66, %c192] : memref<1x8x256xf32, #tpu.memory_space<vmem>>, vector<1x8x32xf32>
    %138 = vector.shape_cast %137 : vector<1x8x32xf32> to vector<8x32xf32>
    %139 = vector.shape_cast %136 : vector<8x32xf32> to vector<1x8x32xf32>
    tpu.vector_store %arg8[%c0_65, %c0_66, %c192], %139 {strides = array<i32>} : memref<1x8x256xf32, #tpu.memory_space<vmem>>, vector<1x8x32xf32>,
    %140 = arith.subf %128, %90 : vector<8x64xf32>
    %141 = arith.mulf %130, %140 : vector<8x64xf32>
    %142 = arith.addf %90, %141 : vector<8x64xf32>
    %143 = arith.subf %126, %93 : vector<8x64xf32>
    %144 = arith.mulf %130, %143 : vector<8x64xf32>
    %145 = arith.addf %93, %144 : vector<8x64xf32>
    %c2 = arith.constant 2 : index
    %c0_67 = arith.constant 0 : index
    %c0_68 = arith.constant 0 : index
    %146 = vector.load %arg11[%c2, %c0_67, %c0_68] : memref<8x8x256xf32, #tpu.memory_space<vmem>>, vector<1x8x256xf32>
    %147 = vector.shape_cast %146 : vector<1x8x256xf32> to vector<8x256xf32>
    %cst_69 = arith.constant dense<0.000000e+00> : vector<8x256xf32>
    %148 = tpu.matmul %142, %39, %cst_69 {dimension_numbers = #tpu.dot_dimension_numbers<[1], [0], [0], [1], [0, 0, 1, 1], [], []>} : vector<8x64xf32>, vector<64x256xf32>, vector<8x256xf32> -> vector<8x256xf32>
    %149 = arith.addf %147, %148 : vector<8x256xf32>
    %150 = vector.extract_strided_slice %149 {offsets = [0, 0], sizes = [8, 64], strides = [1, 1]} : vector<8x256xf32> to vector<8x64xf32>
    %cst_70 = arith.constant 5.000000e-01 : f32
    %151 = vector.broadcast %cst_70 : f32 to vector<8x64xf32>
    %152 = arith.mulf %151, %150 : vector<8x64xf32>
    %153 = math.tanh %152 : vector<8x64xf32>
    %cst_71 = arith.constant 1.000000e+00 : f32
    %154 = vector.broadcast %cst_71 : f32 to vector<8x64xf32>
    %155 = arith.addf %153, %154 : vector<8x64xf32>
    %cst_72 = arith.constant 5.000000e-01 : f32
    %156 = vector.broadcast %cst_72 : f32 to vector<8x64xf32>
    %157 = arith.mulf %156, %155 : vector<8x64xf32>
    %158 = vector.extract_strided_slice %149 {offsets = [0, 64], sizes = [8, 64], strides = [1, 1]} : vector<8x256xf32> to vector<8x64xf32>
    %cst_73 = arith.constant 5.000000e-01 : f32
    %159 = vector.broadcast %cst_73 : f32 to vector<8x64xf32>
    %160 = arith.mulf %159, %158 : vector<8x64xf32>
    %161 = math.tanh %160 : vector<8x64xf32>
    %cst_74 = arith.constant 1.000000e+00 : f32
    %162 = vector.broadcast %cst_74 : f32 to vector<8x64xf32>
    %163 = arith.addf %161, %162 : vector<8x64xf32>
    %cst_75 = arith.constant 5.000000e-01 : f32
    %164 = vector.broadcast %cst_75 : f32 to vector<8x64xf32>
    %165 = arith.mulf %164, %163 : vector<8x64xf32>
    %166 = vector.extract_strided_slice %149 {offsets = [0, 128], sizes = [8, 64], strides = [1, 1]} : vector<8x256xf32> to vector<8x64xf32>
    %167 = math.tanh %166 : vector<8x64xf32>
    %168 = vector.extract_strided_slice %149 {offsets = [0, 192], sizes = [8, 64], strides = [1, 1]} : vector<8x256xf32> to vector<8x64xf32>
    %cst_76 = arith.constant 5.000000e-01 : f32
    %169 = vector.broadcast %cst_76 : f32 to vector<8x64xf32>
    %170 = arith.mulf %169, %168 : vector<8x64xf32>
    %171 = math.tanh %170 : vector<8x64xf32>
    %cst_77 = arith.constant 1.000000e+00 : f32
    %172 = vector.broadcast %cst_77 : f32 to vector<8x64xf32>
    %173 = arith.addf %171, %172 : vector<8x64xf32>
    %cst_78 = arith.constant 5.000000e-01 : f32
    %174 = vector.broadcast %cst_78 : f32 to vector<8x64xf32>
    %175 = arith.mulf %174, %173 : vector<8x64xf32>
    %176 = arith.mulf %165, %145 : vector<8x64xf32>
    %177 = arith.mulf %157, %167 : vector<8x64xf32>
    %178 = arith.addf %176, %177 : vector<8x64xf32>
    %179 = math.tanh %178 : vector<8x64xf32>
    %180 = arith.mulf %175, %179 : vector<8x64xf32>
    %c2_79 = arith.constant 2 : index
    %c0_80 = arith.constant 0 : index
    %c0_81 = arith.constant 0 : index
    %181 = vector.load %arg12[%c2_79, %c0_80, %c0_81] : memref<8x8x64xf32, #tpu.memory_space<vmem>>, vector<1x8x64xf32>
    %182 = vector.shape_cast %181 : vector<1x8x64xf32> to vector<8x64xf32>
    %183 = arith.mulf %182, %180 : vector<8x64xf32>
    %184 = vector.extract_strided_slice %183 {offsets = [0, 0], sizes = [8, 32], strides = [1, 1]} : vector<8x64xf32> to vector<8x32xf32>
    %c0_82 = arith.constant 0 : index
    %c0_83 = arith.constant 0 : index
    %c64 = arith.constant 64 : index
    %185 = vector.load %arg7[%c0_82, %c0_83, %c64] : memref<1x8x256xf32, #tpu.memory_space<vmem>>, vector<1x8x32xf32>
    %186 = vector.shape_cast %185 : vector<1x8x32xf32> to vector<8x32xf32>
    %187 = vector.shape_cast %184 : vector<8x32xf32> to vector<1x8x32xf32>
    tpu.vector_store %arg7[%c0_82, %c0_83, %c64], %187 {strides = array<i32>} : memref<1x8x256xf32, #tpu.memory_space<vmem>>, vector<1x8x32xf32>,
    %188 = vector.extract_strided_slice %183 {offsets = [0, 32], sizes = [8, 32], strides = [1, 1]} : vector<8x64xf32> to vector<8x32xf32>
    %c0_84 = arith.constant 0 : index
    %c0_85 = arith.constant 0 : index
    %c160 = arith.constant 160 : index
    %189 = vector.load %arg8[%c0_84, %c0_85, %c160] : memref<1x8x256xf32, #tpu.memory_space<vmem>>, vector<1x8x32xf32>
    %190 = vector.shape_cast %189 : vector<1x8x32xf32> to vector<8x32xf32>
    %191 = vector.shape_cast %188 : vector<8x32xf32> to vector<1x8x32xf32>
    tpu.vector_store %arg8[%c0_84, %c0_85, %c160], %191 {strides = array<i32>} : memref<1x8x256xf32, #tpu.memory_space<vmem>>, vector<1x8x32xf32>,
    %192 = arith.subf %180, %142 : vector<8x64xf32>
    %193 = arith.mulf %182, %192 : vector<8x64xf32>
    %194 = arith.addf %142, %193 : vector<8x64xf32>
    %195 = arith.subf %178, %145 : vector<8x64xf32>
    %196 = arith.mulf %182, %195 : vector<8x64xf32>
    %197 = arith.addf %145, %196 : vector<8x64xf32>
    %c3 = arith.constant 3 : index
    %c0_86 = arith.constant 0 : index
    %c0_87 = arith.constant 0 : index
    %198 = vector.load %arg11[%c3, %c0_86, %c0_87] : memref<8x8x256xf32, #tpu.memory_space<vmem>>, vector<1x8x256xf32>
    %199 = vector.shape_cast %198 : vector<1x8x256xf32> to vector<8x256xf32>
    %cst_88 = arith.constant dense<0.000000e+00> : vector<8x256xf32>
    %200 = tpu.matmul %194, %39, %cst_88 {dimension_numbers = #tpu.dot_dimension_numbers<[1], [0], [0], [1], [0, 0, 1, 1], [], []>} : vector<8x64xf32>, vector<64x256xf32>, vector<8x256xf32> -> vector<8x256xf32>
    %201 = arith.addf %199, %200 : vector<8x256xf32>
    %202 = vector.extract_strided_slice %201 {offsets = [0, 0], sizes = [8, 64], strides = [1, 1]} : vector<8x256xf32> to vector<8x64xf32>
    %cst_89 = arith.constant 5.000000e-01 : f32
    %203 = vector.broadcast %cst_89 : f32 to vector<8x64xf32>
    %204 = arith.mulf %203, %202 : vector<8x64xf32>
    %205 = math.tanh %204 : vector<8x64xf32>
    %cst_90 = arith.constant 1.000000e+00 : f32
    %206 = vector.broadcast %cst_90 : f32 to vector<8x64xf32>
    %207 = arith.addf %205, %206 : vector<8x64xf32>
    %cst_91 = arith.constant 5.000000e-01 : f32
    %208 = vector.broadcast %cst_91 : f32 to vector<8x64xf32>
    %209 = arith.mulf %208, %207 : vector<8x64xf32>
    %210 = vector.extract_strided_slice %201 {offsets = [0, 64], sizes = [8, 64], strides = [1, 1]} : vector<8x256xf32> to vector<8x64xf32>
    %cst_92 = arith.constant 5.000000e-01 : f32
    %211 = vector.broadcast %cst_92 : f32 to vector<8x64xf32>
    %212 = arith.mulf %211, %210 : vector<8x64xf32>
    %213 = math.tanh %212 : vector<8x64xf32>
    %cst_93 = arith.constant 1.000000e+00 : f32
    %214 = vector.broadcast %cst_93 : f32 to vector<8x64xf32>
    %215 = arith.addf %213, %214 : vector<8x64xf32>
    %cst_94 = arith.constant 5.000000e-01 : f32
    %216 = vector.broadcast %cst_94 : f32 to vector<8x64xf32>
    %217 = arith.mulf %216, %215 : vector<8x64xf32>
    %218 = vector.extract_strided_slice %201 {offsets = [0, 128], sizes = [8, 64], strides = [1, 1]} : vector<8x256xf32> to vector<8x64xf32>
    %219 = math.tanh %218 : vector<8x64xf32>
    %220 = vector.extract_strided_slice %201 {offsets = [0, 192], sizes = [8, 64], strides = [1, 1]} : vector<8x256xf32> to vector<8x64xf32>
    %cst_95 = arith.constant 5.000000e-01 : f32
    %221 = vector.broadcast %cst_95 : f32 to vector<8x64xf32>
    %222 = arith.mulf %221, %220 : vector<8x64xf32>
    %223 = math.tanh %222 : vector<8x64xf32>
    %cst_96 = arith.constant 1.000000e+00 : f32
    %224 = vector.broadcast %cst_96 : f32 to vector<8x64xf32>
    %225 = arith.addf %223, %224 : vector<8x64xf32>
    %cst_97 = arith.constant 5.000000e-01 : f32
    %226 = vector.broadcast %cst_97 : f32 to vector<8x64xf32>
    %227 = arith.mulf %226, %225 : vector<8x64xf32>
    %228 = arith.mulf %217, %197 : vector<8x64xf32>
    %229 = arith.mulf %209, %219 : vector<8x64xf32>
    %230 = arith.addf %228, %229 : vector<8x64xf32>
    %231 = math.tanh %230 : vector<8x64xf32>
    %232 = arith.mulf %227, %231 : vector<8x64xf32>
    %c3_98 = arith.constant 3 : index
    %c0_99 = arith.constant 0 : index
    %c0_100 = arith.constant 0 : index
    %233 = vector.load %arg12[%c3_98, %c0_99, %c0_100] : memref<8x8x64xf32, #tpu.memory_space<vmem>>, vector<1x8x64xf32>
    %234 = vector.shape_cast %233 : vector<1x8x64xf32> to vector<8x64xf32>
    %235 = arith.mulf %234, %232 : vector<8x64xf32>
    %236 = vector.extract_strided_slice %235 {offsets = [0, 0], sizes = [8, 32], strides = [1, 1]} : vector<8x64xf32> to vector<8x32xf32>
    %c0_101 = arith.constant 0 : index
    %c0_102 = arith.constant 0 : index
    %c96 = arith.constant 96 : index
    %237 = vector.load %arg7[%c0_101, %c0_102, %c96] : memref<1x8x256xf32, #tpu.memory_space<vmem>>, vector<1x8x32xf32>
    %238 = vector.shape_cast %237 : vector<1x8x32xf32> to vector<8x32xf32>
    %239 = vector.shape_cast %236 : vector<8x32xf32> to vector<1x8x32xf32>
    tpu.vector_store %arg7[%c0_101, %c0_102, %c96], %239 {strides = array<i32>} : memref<1x8x256xf32, #tpu.memory_space<vmem>>, vector<1x8x32xf32>,
    %240 = vector.extract_strided_slice %235 {offsets = [0, 32], sizes = [8, 32], strides = [1, 1]} : vector<8x64xf32> to vector<8x32xf32>
    %c0_103 = arith.constant 0 : index
    %c0_104 = arith.constant 0 : index
    %c128 = arith.constant 128 : index
    %241 = vector.load %arg8[%c0_103, %c0_104, %c128] : memref<1x8x256xf32, #tpu.memory_space<vmem>>, vector<1x8x32xf32>
    %242 = vector.shape_cast %241 : vector<1x8x32xf32> to vector<8x32xf32>
    %243 = vector.shape_cast %240 : vector<8x32xf32> to vector<1x8x32xf32>
    tpu.vector_store %arg8[%c0_103, %c0_104, %c128], %243 {strides = array<i32>} : memref<1x8x256xf32, #tpu.memory_space<vmem>>, vector<1x8x32xf32>,
    %244 = arith.subf %232, %194 : vector<8x64xf32>
    %245 = arith.mulf %234, %244 : vector<8x64xf32>
    %246 = arith.addf %194, %245 : vector<8x64xf32>
    %247 = arith.subf %230, %197 : vector<8x64xf32>
    %248 = arith.mulf %234, %247 : vector<8x64xf32>
    %249 = arith.addf %197, %248 : vector<8x64xf32>
    %c4 = arith.constant 4 : index
    %c0_105 = arith.constant 0 : index
    %c0_106 = arith.constant 0 : index
    %250 = vector.load %arg11[%c4, %c0_105, %c0_106] : memref<8x8x256xf32, #tpu.memory_space<vmem>>, vector<1x8x256xf32>
    %251 = vector.shape_cast %250 : vector<1x8x256xf32> to vector<8x256xf32>
    %cst_107 = arith.constant dense<0.000000e+00> : vector<8x256xf32>
    %252 = tpu.matmul %246, %39, %cst_107 {dimension_numbers = #tpu.dot_dimension_numbers<[1], [0], [0], [1], [0, 0, 1, 1], [], []>} : vector<8x64xf32>, vector<64x256xf32>, vector<8x256xf32> -> vector<8x256xf32>
    %253 = arith.addf %251, %252 : vector<8x256xf32>
    %254 = vector.extract_strided_slice %253 {offsets = [0, 0], sizes = [8, 64], strides = [1, 1]} : vector<8x256xf32> to vector<8x64xf32>
    %cst_108 = arith.constant 5.000000e-01 : f32
    %255 = vector.broadcast %cst_108 : f32 to vector<8x64xf32>
    %256 = arith.mulf %255, %254 : vector<8x64xf32>
    %257 = math.tanh %256 : vector<8x64xf32>
    %cst_109 = arith.constant 1.000000e+00 : f32
    %258 = vector.broadcast %cst_109 : f32 to vector<8x64xf32>
    %259 = arith.addf %257, %258 : vector<8x64xf32>
    %cst_110 = arith.constant 5.000000e-01 : f32
    %260 = vector.broadcast %cst_110 : f32 to vector<8x64xf32>
    %261 = arith.mulf %260, %259 : vector<8x64xf32>
    %262 = vector.extract_strided_slice %253 {offsets = [0, 64], sizes = [8, 64], strides = [1, 1]} : vector<8x256xf32> to vector<8x64xf32>
    %cst_111 = arith.constant 5.000000e-01 : f32
    %263 = vector.broadcast %cst_111 : f32 to vector<8x64xf32>
    %264 = arith.mulf %263, %262 : vector<8x64xf32>
    %265 = math.tanh %264 : vector<8x64xf32>
    %cst_112 = arith.constant 1.000000e+00 : f32
    %266 = vector.broadcast %cst_112 : f32 to vector<8x64xf32>
    %267 = arith.addf %265, %266 : vector<8x64xf32>
    %cst_113 = arith.constant 5.000000e-01 : f32
    %268 = vector.broadcast %cst_113 : f32 to vector<8x64xf32>
    %269 = arith.mulf %268, %267 : vector<8x64xf32>
    %270 = vector.extract_strided_slice %253 {offsets = [0, 128], sizes = [8, 64], strides = [1, 1]} : vector<8x256xf32> to vector<8x64xf32>
    %271 = math.tanh %270 : vector<8x64xf32>
    %272 = vector.extract_strided_slice %253 {offsets = [0, 192], sizes = [8, 64], strides = [1, 1]} : vector<8x256xf32> to vector<8x64xf32>
    %cst_114 = arith.constant 5.000000e-01 : f32
    %273 = vector.broadcast %cst_114 : f32 to vector<8x64xf32>
    %274 = arith.mulf %273, %272 : vector<8x64xf32>
    %275 = math.tanh %274 : vector<8x64xf32>
    %cst_115 = arith.constant 1.000000e+00 : f32
    %276 = vector.broadcast %cst_115 : f32 to vector<8x64xf32>
    %277 = arith.addf %275, %276 : vector<8x64xf32>
    %cst_116 = arith.constant 5.000000e-01 : f32
    %278 = vector.broadcast %cst_116 : f32 to vector<8x64xf32>
    %279 = arith.mulf %278, %277 : vector<8x64xf32>
    %280 = arith.mulf %269, %249 : vector<8x64xf32>
    %281 = arith.mulf %261, %271 : vector<8x64xf32>
    %282 = arith.addf %280, %281 : vector<8x64xf32>
    %283 = math.tanh %282 : vector<8x64xf32>
    %284 = arith.mulf %279, %283 : vector<8x64xf32>
    %c4_117 = arith.constant 4 : index
    %c0_118 = arith.constant 0 : index
    %c0_119 = arith.constant 0 : index
    %285 = vector.load %arg12[%c4_117, %c0_118, %c0_119] : memref<8x8x64xf32, #tpu.memory_space<vmem>>, vector<1x8x64xf32>
    %286 = vector.shape_cast %285 : vector<1x8x64xf32> to vector<8x64xf32>
    %287 = arith.mulf %286, %284 : vector<8x64xf32>
    %288 = vector.extract_strided_slice %287 {offsets = [0, 0], sizes = [8, 32], strides = [1, 1]} : vector<8x64xf32> to vector<8x32xf32>
    %c0_120 = arith.constant 0 : index
    %c0_121 = arith.constant 0 : index
    %c128_122 = arith.constant 128 : index
    %289 = vector.load %arg7[%c0_120, %c0_121, %c128_122] : memref<1x8x256xf32, #tpu.memory_space<vmem>>, vector<1x8x32xf32>
    %290 = vector.shape_cast %289 : vector<1x8x32xf32> to vector<8x32xf32>
    %291 = vector.shape_cast %288 : vector<8x32xf32> to vector<1x8x32xf32>
    tpu.vector_store %arg7[%c0_120, %c0_121, %c128_122], %291 {strides = array<i32>} : memref<1x8x256xf32, #tpu.memory_space<vmem>>, vector<1x8x32xf32>,
    %292 = vector.extract_strided_slice %287 {offsets = [0, 32], sizes = [8, 32], strides = [1, 1]} : vector<8x64xf32> to vector<8x32xf32>
    %c0_123 = arith.constant 0 : index
    %c0_124 = arith.constant 0 : index
    %c96_125 = arith.constant 96 : index
    %293 = vector.load %arg8[%c0_123, %c0_124, %c96_125] : memref<1x8x256xf32, #tpu.memory_space<vmem>>, vector<1x8x32xf32>
    %294 = vector.shape_cast %293 : vector<1x8x32xf32> to vector<8x32xf32>
    %295 = vector.shape_cast %292 : vector<8x32xf32> to vector<1x8x32xf32>
    tpu.vector_store %arg8[%c0_123, %c0_124, %c96_125], %295 {strides = array<i32>} : memref<1x8x256xf32, #tpu.memory_space<vmem>>, vector<1x8x32xf32>,
    %296 = arith.subf %284, %246 : vector<8x64xf32>
    %297 = arith.mulf %286, %296 : vector<8x64xf32>
    %298 = arith.addf %246, %297 : vector<8x64xf32>
    %299 = arith.subf %282, %249 : vector<8x64xf32>
    %300 = arith.mulf %286, %299 : vector<8x64xf32>
    %301 = arith.addf %249, %300 : vector<8x64xf32>
    %c5 = arith.constant 5 : index
    %c0_126 = arith.constant 0 : index
    %c0_127 = arith.constant 0 : index
    %302 = vector.load %arg11[%c5, %c0_126, %c0_127] : memref<8x8x256xf32, #tpu.memory_space<vmem>>, vector<1x8x256xf32>
    %303 = vector.shape_cast %302 : vector<1x8x256xf32> to vector<8x256xf32>
    %cst_128 = arith.constant dense<0.000000e+00> : vector<8x256xf32>
    %304 = tpu.matmul %298, %39, %cst_128 {dimension_numbers = #tpu.dot_dimension_numbers<[1], [0], [0], [1], [0, 0, 1, 1], [], []>} : vector<8x64xf32>, vector<64x256xf32>, vector<8x256xf32> -> vector<8x256xf32>
    %305 = arith.addf %303, %304 : vector<8x256xf32>
    %306 = vector.extract_strided_slice %305 {offsets = [0, 0], sizes = [8, 64], strides = [1, 1]} : vector<8x256xf32> to vector<8x64xf32>
    %cst_129 = arith.constant 5.000000e-01 : f32
    %307 = vector.broadcast %cst_129 : f32 to vector<8x64xf32>
    %308 = arith.mulf %307, %306 : vector<8x64xf32>
    %309 = math.tanh %308 : vector<8x64xf32>
    %cst_130 = arith.constant 1.000000e+00 : f32
    %310 = vector.broadcast %cst_130 : f32 to vector<8x64xf32>
    %311 = arith.addf %309, %310 : vector<8x64xf32>
    %cst_131 = arith.constant 5.000000e-01 : f32
    %312 = vector.broadcast %cst_131 : f32 to vector<8x64xf32>
    %313 = arith.mulf %312, %311 : vector<8x64xf32>
    %314 = vector.extract_strided_slice %305 {offsets = [0, 64], sizes = [8, 64], strides = [1, 1]} : vector<8x256xf32> to vector<8x64xf32>
    %cst_132 = arith.constant 5.000000e-01 : f32
    %315 = vector.broadcast %cst_132 : f32 to vector<8x64xf32>
    %316 = arith.mulf %315, %314 : vector<8x64xf32>
    %317 = math.tanh %316 : vector<8x64xf32>
    %cst_133 = arith.constant 1.000000e+00 : f32
    %318 = vector.broadcast %cst_133 : f32 to vector<8x64xf32>
    %319 = arith.addf %317, %318 : vector<8x64xf32>
    %cst_134 = arith.constant 5.000000e-01 : f32
    %320 = vector.broadcast %cst_134 : f32 to vector<8x64xf32>
    %321 = arith.mulf %320, %319 : vector<8x64xf32>
    %322 = vector.extract_strided_slice %305 {offsets = [0, 128], sizes = [8, 64], strides = [1, 1]} : vector<8x256xf32> to vector<8x64xf32>
    %323 = math.tanh %322 : vector<8x64xf32>
    %324 = vector.extract_strided_slice %305 {offsets = [0, 192], sizes = [8, 64], strides = [1, 1]} : vector<8x256xf32> to vector<8x64xf32>
    %cst_135 = arith.constant 5.000000e-01 : f32
    %325 = vector.broadcast %cst_135 : f32 to vector<8x64xf32>
    %326 = arith.mulf %325, %324 : vector<8x64xf32>
    %327 = math.tanh %326 : vector<8x64xf32>
    %cst_136 = arith.constant 1.000000e+00 : f32
    %328 = vector.broadcast %cst_136 : f32 to vector<8x64xf32>
    %329 = arith.addf %327, %328 : vector<8x64xf32>
    %cst_137 = arith.constant 5.000000e-01 : f32
    %330 = vector.broadcast %cst_137 : f32 to vector<8x64xf32>
    %331 = arith.mulf %330, %329 : vector<8x64xf32>
    %332 = arith.mulf %321, %301 : vector<8x64xf32>
    %333 = arith.mulf %313, %323 : vector<8x64xf32>
    %334 = arith.addf %332, %333 : vector<8x64xf32>
    %335 = math.tanh %334 : vector<8x64xf32>
    %336 = arith.mulf %331, %335 : vector<8x64xf32>
    %c5_138 = arith.constant 5 : index
    %c0_139 = arith.constant 0 : index
    %c0_140 = arith.constant 0 : index
    %337 = vector.load %arg12[%c5_138, %c0_139, %c0_140] : memref<8x8x64xf32, #tpu.memory_space<vmem>>, vector<1x8x64xf32>
    %338 = vector.shape_cast %337 : vector<1x8x64xf32> to vector<8x64xf32>
    %339 = arith.mulf %338, %336 : vector<8x64xf32>
    %340 = vector.extract_strided_slice %339 {offsets = [0, 0], sizes = [8, 32], strides = [1, 1]} : vector<8x64xf32> to vector<8x32xf32>
    %c0_141 = arith.constant 0 : index
    %c0_142 = arith.constant 0 : index
    %c160_143 = arith.constant 160 : index
    %341 = vector.load %arg7[%c0_141, %c0_142, %c160_143] : memref<1x8x256xf32, #tpu.memory_space<vmem>>, vector<1x8x32xf32>
    %342 = vector.shape_cast %341 : vector<1x8x32xf32> to vector<8x32xf32>
    %343 = vector.shape_cast %340 : vector<8x32xf32> to vector<1x8x32xf32>
    tpu.vector_store %arg7[%c0_141, %c0_142, %c160_143], %343 {strides = array<i32>} : memref<1x8x256xf32, #tpu.memory_space<vmem>>, vector<1x8x32xf32>,
    %344 = vector.extract_strided_slice %339 {offsets = [0, 32], sizes = [8, 32], strides = [1, 1]} : vector<8x64xf32> to vector<8x32xf32>
    %c0_144 = arith.constant 0 : index
    %c0_145 = arith.constant 0 : index
    %c64_146 = arith.constant 64 : index
    %345 = vector.load %arg8[%c0_144, %c0_145, %c64_146] : memref<1x8x256xf32, #tpu.memory_space<vmem>>, vector<1x8x32xf32>
    %346 = vector.shape_cast %345 : vector<1x8x32xf32> to vector<8x32xf32>
    %347 = vector.shape_cast %344 : vector<8x32xf32> to vector<1x8x32xf32>
    tpu.vector_store %arg8[%c0_144, %c0_145, %c64_146], %347 {strides = array<i32>} : memref<1x8x256xf32, #tpu.memory_space<vmem>>, vector<1x8x32xf32>,
    %348 = arith.subf %336, %298 : vector<8x64xf32>
    %349 = arith.mulf %338, %348 : vector<8x64xf32>
    %350 = arith.addf %298, %349 : vector<8x64xf32>
    %351 = arith.subf %334, %301 : vector<8x64xf32>
    %352 = arith.mulf %338, %351 : vector<8x64xf32>
    %353 = arith.addf %301, %352 : vector<8x64xf32>
    %c6 = arith.constant 6 : index
    %c0_147 = arith.constant 0 : index
    %c0_148 = arith.constant 0 : index
    %354 = vector.load %arg11[%c6, %c0_147, %c0_148] : memref<8x8x256xf32, #tpu.memory_space<vmem>>, vector<1x8x256xf32>
    %355 = vector.shape_cast %354 : vector<1x8x256xf32> to vector<8x256xf32>
    %cst_149 = arith.constant dense<0.000000e+00> : vector<8x256xf32>
    %356 = tpu.matmul %350, %39, %cst_149 {dimension_numbers = #tpu.dot_dimension_numbers<[1], [0], [0], [1], [0, 0, 1, 1], [], []>} : vector<8x64xf32>, vector<64x256xf32>, vector<8x256xf32> -> vector<8x256xf32>
    %357 = arith.addf %355, %356 : vector<8x256xf32>
    %358 = vector.extract_strided_slice %357 {offsets = [0, 0], sizes = [8, 64], strides = [1, 1]} : vector<8x256xf32> to vector<8x64xf32>
    %cst_150 = arith.constant 5.000000e-01 : f32
    %359 = vector.broadcast %cst_150 : f32 to vector<8x64xf32>
    %360 = arith.mulf %359, %358 : vector<8x64xf32>
    %361 = math.tanh %360 : vector<8x64xf32>
    %cst_151 = arith.constant 1.000000e+00 : f32
    %362 = vector.broadcast %cst_151 : f32 to vector<8x64xf32>
    %363 = arith.addf %361, %362 : vector<8x64xf32>
    %cst_152 = arith.constant 5.000000e-01 : f32
    %364 = vector.broadcast %cst_152 : f32 to vector<8x64xf32>
    %365 = arith.mulf %364, %363 : vector<8x64xf32>
    %366 = vector.extract_strided_slice %357 {offsets = [0, 64], sizes = [8, 64], strides = [1, 1]} : vector<8x256xf32> to vector<8x64xf32>
    %cst_153 = arith.constant 5.000000e-01 : f32
    %367 = vector.broadcast %cst_153 : f32 to vector<8x64xf32>
    %368 = arith.mulf %367, %366 : vector<8x64xf32>
    %369 = math.tanh %368 : vector<8x64xf32>
    %cst_154 = arith.constant 1.000000e+00 : f32
    %370 = vector.broadcast %cst_154 : f32 to vector<8x64xf32>
    %371 = arith.addf %369, %370 : vector<8x64xf32>
    %cst_155 = arith.constant 5.000000e-01 : f32
    %372 = vector.broadcast %cst_155 : f32 to vector<8x64xf32>
    %373 = arith.mulf %372, %371 : vector<8x64xf32>
    %374 = vector.extract_strided_slice %357 {offsets = [0, 128], sizes = [8, 64], strides = [1, 1]} : vector<8x256xf32> to vector<8x64xf32>
    %375 = math.tanh %374 : vector<8x64xf32>
    %376 = vector.extract_strided_slice %357 {offsets = [0, 192], sizes = [8, 64], strides = [1, 1]} : vector<8x256xf32> to vector<8x64xf32>
    %cst_156 = arith.constant 5.000000e-01 : f32
    %377 = vector.broadcast %cst_156 : f32 to vector<8x64xf32>
    %378 = arith.mulf %377, %376 : vector<8x64xf32>
    %379 = math.tanh %378 : vector<8x64xf32>
    %cst_157 = arith.constant 1.000000e+00 : f32
    %380 = vector.broadcast %cst_157 : f32 to vector<8x64xf32>
    %381 = arith.addf %379, %380 : vector<8x64xf32>
    %cst_158 = arith.constant 5.000000e-01 : f32
    %382 = vector.broadcast %cst_158 : f32 to vector<8x64xf32>
    %383 = arith.mulf %382, %381 : vector<8x64xf32>
    %384 = arith.mulf %373, %353 : vector<8x64xf32>
    %385 = arith.mulf %365, %375 : vector<8x64xf32>
    %386 = arith.addf %384, %385 : vector<8x64xf32>
    %387 = math.tanh %386 : vector<8x64xf32>
    %388 = arith.mulf %383, %387 : vector<8x64xf32>
    %c6_159 = arith.constant 6 : index
    %c0_160 = arith.constant 0 : index
    %c0_161 = arith.constant 0 : index
    %389 = vector.load %arg12[%c6_159, %c0_160, %c0_161] : memref<8x8x64xf32, #tpu.memory_space<vmem>>, vector<1x8x64xf32>
    %390 = vector.shape_cast %389 : vector<1x8x64xf32> to vector<8x64xf32>
    %391 = arith.mulf %390, %388 : vector<8x64xf32>
    %392 = vector.extract_strided_slice %391 {offsets = [0, 0], sizes = [8, 32], strides = [1, 1]} : vector<8x64xf32> to vector<8x32xf32>
    %c0_162 = arith.constant 0 : index
    %c0_163 = arith.constant 0 : index
    %c192_164 = arith.constant 192 : index
    %393 = vector.load %arg7[%c0_162, %c0_163, %c192_164] : memref<1x8x256xf32, #tpu.memory_space<vmem>>, vector<1x8x32xf32>
    %394 = vector.shape_cast %393 : vector<1x8x32xf32> to vector<8x32xf32>
    %395 = vector.shape_cast %392 : vector<8x32xf32> to vector<1x8x32xf32>
    tpu.vector_store %arg7[%c0_162, %c0_163, %c192_164], %395 {strides = array<i32>} : memref<1x8x256xf32, #tpu.memory_space<vmem>>, vector<1x8x32xf32>,
    %396 = vector.extract_strided_slice %391 {offsets = [0, 32], sizes = [8, 32], strides = [1, 1]} : vector<8x64xf32> to vector<8x32xf32>
    %c0_165 = arith.constant 0 : index
    %c0_166 = arith.constant 0 : index
    %c32_167 = arith.constant 32 : index
    %397 = vector.load %arg8[%c0_165, %c0_166, %c32_167] : memref<1x8x256xf32, #tpu.memory_space<vmem>>, vector<1x8x32xf32>
    %398 = vector.shape_cast %397 : vector<1x8x32xf32> to vector<8x32xf32>
    %399 = vector.shape_cast %396 : vector<8x32xf32> to vector<1x8x32xf32>
    tpu.vector_store %arg8[%c0_165, %c0_166, %c32_167], %399 {strides = array<i32>} : memref<1x8x256xf32, #tpu.memory_space<vmem>>, vector<1x8x32xf32>,
    %400 = arith.subf %388, %350 : vector<8x64xf32>
    %401 = arith.mulf %390, %400 : vector<8x64xf32>
    %402 = arith.addf %350, %401 : vector<8x64xf32>
    %403 = arith.subf %386, %353 : vector<8x64xf32>
    %404 = arith.mulf %390, %403 : vector<8x64xf32>
    %405 = arith.addf %353, %404 : vector<8x64xf32>
    %c7 = arith.constant 7 : index
    %c0_168 = arith.constant 0 : index
    %c0_169 = arith.constant 0 : index
    %406 = vector.load %arg11[%c7, %c0_168, %c0_169] : memref<8x8x256xf32, #tpu.memory_space<vmem>>, vector<1x8x256xf32>
    %407 = vector.shape_cast %406 : vector<1x8x256xf32> to vector<8x256xf32>
    %cst_170 = arith.constant dense<0.000000e+00> : vector<8x256xf32>
    %408 = tpu.matmul %402, %39, %cst_170 {dimension_numbers = #tpu.dot_dimension_numbers<[1], [0], [0], [1], [0, 0, 1, 1], [], []>} : vector<8x64xf32>, vector<64x256xf32>, vector<8x256xf32> -> vector<8x256xf32>
    %409 = arith.addf %407, %408 : vector<8x256xf32>
    %410 = vector.extract_strided_slice %409 {offsets = [0, 0], sizes = [8, 64], strides = [1, 1]} : vector<8x256xf32> to vector<8x64xf32>
    %cst_171 = arith.constant 5.000000e-01 : f32
    %411 = vector.broadcast %cst_171 : f32 to vector<8x64xf32>
    %412 = arith.mulf %411, %410 : vector<8x64xf32>
    %413 = math.tanh %412 : vector<8x64xf32>
    %cst_172 = arith.constant 1.000000e+00 : f32
    %414 = vector.broadcast %cst_172 : f32 to vector<8x64xf32>
    %415 = arith.addf %413, %414 : vector<8x64xf32>
    %cst_173 = arith.constant 5.000000e-01 : f32
    %416 = vector.broadcast %cst_173 : f32 to vector<8x64xf32>
    %417 = arith.mulf %416, %415 : vector<8x64xf32>
    %418 = vector.extract_strided_slice %409 {offsets = [0, 64], sizes = [8, 64], strides = [1, 1]} : vector<8x256xf32> to vector<8x64xf32>
    %cst_174 = arith.constant 5.000000e-01 : f32
    %419 = vector.broadcast %cst_174 : f32 to vector<8x64xf32>
    %420 = arith.mulf %419, %418 : vector<8x64xf32>
    %421 = math.tanh %420 : vector<8x64xf32>
    %cst_175 = arith.constant 1.000000e+00 : f32
    %422 = vector.broadcast %cst_175 : f32 to vector<8x64xf32>
    %423 = arith.addf %421, %422 : vector<8x64xf32>
    %cst_176 = arith.constant 5.000000e-01 : f32
    %424 = vector.broadcast %cst_176 : f32 to vector<8x64xf32>
    %425 = arith.mulf %424, %423 : vector<8x64xf32>
    %426 = vector.extract_strided_slice %409 {offsets = [0, 128], sizes = [8, 64], strides = [1, 1]} : vector<8x256xf32> to vector<8x64xf32>
    %427 = math.tanh %426 : vector<8x64xf32>
    %428 = vector.extract_strided_slice %409 {offsets = [0, 192], sizes = [8, 64], strides = [1, 1]} : vector<8x256xf32> to vector<8x64xf32>
    %cst_177 = arith.constant 5.000000e-01 : f32
    %429 = vector.broadcast %cst_177 : f32 to vector<8x64xf32>
    %430 = arith.mulf %429, %428 : vector<8x64xf32>
    %431 = math.tanh %430 : vector<8x64xf32>
    %cst_178 = arith.constant 1.000000e+00 : f32
    %432 = vector.broadcast %cst_178 : f32 to vector<8x64xf32>
    %433 = arith.addf %431, %432 : vector<8x64xf32>
    %cst_179 = arith.constant 5.000000e-01 : f32
    %434 = vector.broadcast %cst_179 : f32 to vector<8x64xf32>
    %435 = arith.mulf %434, %433 : vector<8x64xf32>
    %436 = arith.mulf %425, %405 : vector<8x64xf32>
    %437 = arith.mulf %417, %427 : vector<8x64xf32>
    %438 = arith.addf %436, %437 : vector<8x64xf32>
    %439 = math.tanh %438 : vector<8x64xf32>
    %440 = arith.mulf %435, %439 : vector<8x64xf32>
    %c7_180 = arith.constant 7 : index
    %c0_181 = arith.constant 0 : index
    %c0_182 = arith.constant 0 : index
    %441 = vector.load %arg12[%c7_180, %c0_181, %c0_182] : memref<8x8x64xf32, #tpu.memory_space<vmem>>, vector<1x8x64xf32>
    %442 = vector.shape_cast %441 : vector<1x8x64xf32> to vector<8x64xf32>
    %443 = arith.mulf %442, %440 : vector<8x64xf32>
    %444 = vector.extract_strided_slice %443 {offsets = [0, 0], sizes = [8, 32], strides = [1, 1]} : vector<8x64xf32> to vector<8x32xf32>
    %c0_183 = arith.constant 0 : index
    %c0_184 = arith.constant 0 : index
    %c224_185 = arith.constant 224 : index
    %445 = vector.load %arg7[%c0_183, %c0_184, %c224_185] : memref<1x8x256xf32, #tpu.memory_space<vmem>>, vector<1x8x32xf32>
    %446 = vector.shape_cast %445 : vector<1x8x32xf32> to vector<8x32xf32>
    %447 = vector.shape_cast %444 : vector<8x32xf32> to vector<1x8x32xf32>
    tpu.vector_store %arg7[%c0_183, %c0_184, %c224_185], %447 {strides = array<i32>} : memref<1x8x256xf32, #tpu.memory_space<vmem>>, vector<1x8x32xf32>,
    %448 = vector.extract_strided_slice %443 {offsets = [0, 32], sizes = [8, 32], strides = [1, 1]} : vector<8x64xf32> to vector<8x32xf32>
    %c0_186 = arith.constant 0 : index
    %c0_187 = arith.constant 0 : index
    %c0_188 = arith.constant 0 : index
    %449 = vector.load %arg8[%c0_186, %c0_187, %c0_188] : memref<1x8x256xf32, #tpu.memory_space<vmem>>, vector<1x8x32xf32>
    %450 = vector.shape_cast %449 : vector<1x8x32xf32> to vector<8x32xf32>
    %451 = vector.shape_cast %448 : vector<8x32xf32> to vector<1x8x32xf32>
    tpu.vector_store %arg8[%c0_186, %c0_187, %c0_188], %451 {strides = array<i32>} : memref<1x8x256xf32, #tpu.memory_space<vmem>>, vector<1x8x32xf32>,
    %452 = arith.subf %440, %402 : vector<8x64xf32>
    %453 = arith.mulf %442, %452 : vector<8x64xf32>
    %454 = arith.addf %402, %453 : vector<8x64xf32>
    %455 = arith.subf %438, %405 : vector<8x64xf32>
    %456 = arith.mulf %442, %455 : vector<8x64xf32>
    %457 = arith.addf %405, %456 : vector<8x64xf32>
    %c0_189 = arith.constant 0 : index
    %c0_190 = arith.constant 0 : index
    %458 = vector.load %arg9[%c0_189, %c0_190] : memref<8x64xf32, #tpu.memory_space<vmem>>, vector<8x64xf32>
    tpu.vector_store %arg9[%c0_189, %c0_190], %454 {strides = array<i32>} : memref<8x64xf32, #tpu.memory_space<vmem>>, vector<8x64xf32>,
    %c0_191 = arith.constant 0 : index
    %c0_192 = arith.constant 0 : index
    %459 = vector.load %arg10[%c0_191, %c0_192] : memref<8x64xf32, #tpu.memory_space<vmem>>, vector<8x64xf32>
    tpu.vector_store %arg10[%c0_191, %c0_192], %457 {strides = array<i32>} : memref<8x64xf32, #tpu.memory_space<vmem>>, vector<8x64xf32>,
    return
  }
  func.func @transform_0(%arg0: i32) -> (i32, i32) {
    %c0_i32 = arith.constant 0 : i32
    %c0_i32_0 = arith.constant 0 : i32
    %c0_i32_1 = arith.constant 0 : i32
    return %c0_i32, %c0_i32_0 : i32, i32
  }
  func.func @transform_1(%arg0: i32) -> (i32, i32, i32) {
    %c0_i32 = arith.constant 0 : i32
    %c0_i32_0 = arith.constant 0 : i32
    %c0_i32_1 = arith.constant 0 : i32
    return %arg0, %c0_i32, %c0_i32_0 : i32, i32, i32
  }
  func.func @transform_2(%arg0: i32) -> (i32, i32, i32) {
    %c0_i32 = arith.constant 0 : i32
    %c0_i32_0 = arith.constant 0 : i32
    %c0_i32_1 = arith.constant 0 : i32
    return %arg0, %c0_i32, %c0_i32_0 : i32, i32, i32
  }
  func.func @transform_3(%arg0: i32) -> (i32, i32) {
    %c0_i32 = arith.constant 0 : i32
    %c0_i32_0 = arith.constant 0 : i32
    %c0_i32_1 = arith.constant 0 : i32
    return %c0_i32, %c0_i32_0 : i32, i32
  }
  func.func @transform_4(%arg0: i32) -> (i32, i32) {
    %c0_i32 = arith.constant 0 : i32
    %c0_i32_0 = arith.constant 0 : i32
    %c0_i32_1 = arith.constant 0 : i32
    return %c0_i32, %c0_i32_0 : i32, i32
  }
  func.func @transform_5(%arg0: i32) -> (i32, i32) {
    %c0_i32 = arith.constant 0 : i32
    %c0_i32_0 = arith.constant 0 : i32
    %c0_i32_1 = arith.constant 0 : i32
    return %c0_i32, %c0_i32_0 : i32, i32
  }
  func.func @transform_6(%arg0: i32) -> (i32, i32, i32) {
    %c0_i32 = arith.constant 0 : i32
    %c0_i32_0 = arith.constant 0 : i32
    %c0_i32_1 = arith.constant 0 : i32
    return %arg0, %c0_i32, %c0_i32_0 : i32, i32, i32
  }
  func.func @transform_7(%arg0: i32) -> (i32, i32, i32) {
    %c0_i32 = arith.constant 0 : i32
    %0 = arith.subi %c0_i32, %arg0 : i32
    %c0_i32_0 = arith.constant 0 : i32
    %c0_i32_1 = arith.constant 0 : i32
    %c0_i32_2 = arith.constant 0 : i32
    return %0, %c0_i32_0, %c0_i32_1 : i32, i32, i32
  }
}

</mosaic_0001>

<bundles_post_ra>
// kernel: bilstm_pallas.1
= control target key start
LH: loop header
LB: loop body
LE: loop exit
PB: predicated region body
PF: predicated region fallthrough
CT: control target
= control target key end

     0   :  { %vm42_vm0 = vcmask 523264   ;;  %v1848_v3 = vmov 0.0   ;;  %vm69_vm1 = vcmask 130048   ;;  %s1849_s23 = smov 64   ;;  %v1850_v55 = vmov 0   ;;  %s1858_s13 = smov 32   ;;  %s2433_s3 = inlined_call_operand.vmem [shape: f32[32,256], index: 3, kind: input, shape index: {}]   ;;  %s2434_s2 = inlined_call_operand.vmem [shape: f32[8,8,16], index: 2, kind: input, shape index: {}]   ;;  %s2435_s5 = inlined_call_operand.vmem [shape: f32[64,256], index: 5, kind: input, shape index: {}]   ;;  %s2436_s1 = inlined_call_operand.vmem [shape: f32[8,8,16], index: 1, kind: input, shape index: {}]   ;;  %s2437_s0 = inlined_call_operand.vmem [shape: s32[8,1], index: 0, kind: input, shape index: {}]   ;;  %s2438_s4 = inlined_call_operand.vmem [shape: f32[1,256], index: 4, kind: input, shape index: {}]   ;;  %s2439_s6 = inlined_call_operand.vmem [shape: f32[1,8,256], index: 6, kind: output, shape index: {0}]   ;;  %s2440_s7 = inlined_call_operand.vmem [shape: f32[1,8,256], index: 7, kind: output, shape index: {1}]  }
   0x1   :  { %v50_v0 = vld [vmem:[%s2433_s3 + $0x28] sm:$0xff]  ;;  %v52_v1 = vld [vmem:[%s2433_s3 + $0x38] sm:$0xff]  ;;  %v49_v2 = vld [vmem:[%s2433_s3 + $0x20] sm:$0xff]  ;;  %158 = vmatprep.mubr.f32.mxu1 %v1848_v3  ;;  %43 = vst.msk [vmem:[#allocation2] sm:$0xff] %vm42_vm0, %v1848_v3  ;;  %807 = vmatprep.mubr.f32.mxu0 %v1848_v3  ;;  %v346_v63 = vlaneseq  ;;  %vm579_vm11 = vcmask 261120   ;;  %s1859_s14 = smov 96  }
   0x2   :  { %44 = vst.msk [vmem:[#allocation3] sm:$0xff] %vm42_vm0, %v1848_v3  ;;  %v1586_v4 = vpack.c.bf16 %v52_v1, %v50_v0  ;;  %v51_v5 = vld [vmem:[%s2433_s3 + $0x30] sm:$0xff]  ;;  %v46_v6 = vld [vmem:[%s2433_s3 + $0x8] sm:$0xff]  ;;  %v48_v8 = vld [vmem:[%s2433_s3 + $0x18] sm:$0xff]  ;;  %1782 = vset.pattern.permute.xlu1 %v1850_v55  ;;  %1783 = vset.pattern.permute.xlu0 %v1850_v55  ;;  %vm585_vm12 = vcmask 1048320   ;;  %vm716_vm13 = vcmask 523520  }
   0x3   :  { %v1588_v7 = vpack.c.bf16 %v51_v5, %v49_v2  ;;  %v45_v9 = vld [vmem:[%s2433_s3] sm:$0xff]  ;;  %v47_v10 = vld [vmem:[%s2433_s3 + $0x10] sm:$0xff]  ;;  %v1590_v11 = vpack.c.bf16 %v48_v8, %v46_v6  ;;  %v456_v14 = vld [vmem:[%s2435_s5 + $0x8] sm:$0xff]  ;;  %v347_v2 = vshrl.u32 %v346_v63, 7  ;;  %vm718_vm14 = vcmask 785920  }
   0x4   :  { %1587 = vmatprep.subr.bf16.mxu1 %v1586_v4  ;;  %v61_v12 = vld [vmem:[%s2434_s2] sm:$0xff]  ;;  %v1592_v13 = vpack.c.bf16 %v47_v10, %v45_v9  ;;  %v458_v15 = vld [vmem:[%s2435_s5 + $0x18] sm:$0xff]  ;;  %v457_v17 = vld [vmem:[%s2435_s5 + $0x10] sm:$0xff] }
   0x5   :  { %1589 = vmatpush1.bf16.msra.mxu1 %v1588_v7  ;;  %v455_v16 = vld [vmem:[%s2435_s5] sm:$0xff]  ;;  %v1946_v18 = vpack.c.bf16 %v458_v15, %v456_v14  ;;  %v460_v19 = vld [vmem:[%s2435_s5 + $0x28] sm:$0xff]  ;;  %v462_v22 = vld [vmem:[%s2435_s5 + $0x38] sm:$0xff]  ;;  %v348_v6 = vsub.s32 0, %v347_v2 }
   0x6   :  { %1591 = vmatprep.subr.bf16.mxu1 %v1590_v11  ;;  %v62_v20 = vld [vmem:[%s2434_s2 + $0x8] sm:$0xff]  ;;  %v1955_v21 = vpack.c.bf16 %v457_v17, %v455_v16  ;;  %v1961_v23 = vpack.c.bf16 %v462_v22, %v460_v19  ;;  %v459_v24 = vld [vmem:[%s2435_s5 + $0x20] sm:$0xff]  ;;  %v461_v25 = vld [vmem:[%s2435_s5 + $0x30] sm:$0xff]  ;;  %v352_v11 = vsub.s32 1, %v347_v2 }
   0x7   :  { %1627 = vmatprep.subr.bf16.mxu0 %v1946_v18  ;;  %v464_v26 = vld [vmem:[%s2435_s5 + $0x48] sm:$0xff]  ;;  %v466_v27 = vld [vmem:[%s2435_s5 + $0x58] sm:$0xff]  ;;  %v63_v28 = vld [vmem:[%s2434_s2 + $0x10] sm:$0xff]  ;;  %v1983_v29 = vpack.c.bf16 %v461_v25, %v459_v24 }
   0x8   :  { %1554 = vmatmul.mubr.msk.f32.vlgmr.msra.gmra.mrb[0].mxu1 %vm69_vm1, %v61_v12  ;;  %1629 = vmatpush1.bf16.msra.mxu0 %v1955_v21  ;;  %v1985_v30 = vld [vmem:[#allocation2] sm:$0xff]  ;;  %v1989_v32 = vpack.c.bf16 %v466_v27, %v464_v26  ;;  %v465_v34 = vld [vmem:[%s2435_s5 + $0x50] sm:$0xff]  ;;  %v468_v35 = vld [vmem:[%s2435_s5 + $0x68] sm:$0xff]  ;;  %v392_v26 = vand.u32 127, %v346_v63 }
   0x9   :  { %1593 = vmatpush1.bf16.msra.mxu1 %v1592_v13  ;;  %164 = vmatprep.mubr.f32.mxu1 %v1848_v3  ;;  %v1987_v31 = vld [vmem:[#allocation3] sm:$0xff]  ;;  %v463_v33 = vld [vmem:[%s2435_s5 + $0x40] sm:$0xff]  ;;  %v470_v36 = vld [vmem:[%s2435_s5 + $0x78] sm:$0xff] }
   0xa   :  { %1595 = vmatprep.subr.bf16.mxu1 %v1946_v18  ;;  %1631 = vmatprep.subr.bf16.mxu0 %v1961_v23  ;;  %v64_v37 = vld [vmem:[%s2434_s2 + $0x18] sm:$0xff]  ;;  %v2014_v38 = vpack.c.bf16 %v465_v34, %v463_v33  ;;  %v2016_v39 = vpack.c.bf16 %v470_v36, %v468_v35  ;;  %v467_v40 = vld [vmem:[%s2435_s5 + $0x60] sm:$0xff]  ;;  %v469_v41 = vld [vmem:[%s2435_s5 + $0x70] sm:$0xff]  ;;  %vm393_vm2 = vcmp.lt.s32.totalorder %v392_v26, 32  ;;  %v1851_v34 = vmov 7  }
   0xb   :  { %561 = vrot.lane.b32.xlu0 %v1987_v31, %s1849_s23  ;;  %587 = vrot.lane.b32.xlu1 %v1985_v30, %s1849_s23  ;;  %v65_v42 = vld [vmem:[%s2434_s2 + $0x20] sm:$0xff]  ;;  %v2031_v43 = vpack.c.bf16 %v469_v41, %v467_v40  ;;  %v66_v44 = vld [vmem:[%s2434_s2 + $0x28] sm:$0xff]  ;;  %v410_v35 = vsel %vm393_vm2, 0, %v1851_v34  ;;  %v1852_v36 = vmov 6   ;;  %v1853_v40 = vmov 5  }
   0xc   :  { %1555 = vmatmul.mubr.msk.f32.gmra.mrb[2].mxu1 %vm69_vm1, %v62_v20  ;;  %1633 = vmatpush1.bf16.msra.mxu0 %v1983_v29  ;;  %v67_v45 = vld [vmem:[%s2434_s2 + $0x30] sm:$0xff]  ;;  %v68_v46 = vld [vmem:[%s2434_s2 + $0x38] sm:$0xff]  ;;  %v53_v47 = vld [vmem:[%s2436_s1] sm:$0xff]  ;;  %v412_v41 = vsel %vm393_vm2, 2, %v1853_v40 }
   0xd   :  { %170 = vmatprep.mubr.f32.mxu1 %v1848_v3  ;;  %1635 = vmatprep.subr.bf16.mxu0 %v1989_v32  ;;  %v54_v48 = vld [vmem:[%s2436_s1 + $0x8] sm:$0xff]  ;;  %v55_v49 = vld [vmem:[%s2436_s1 + $0x10] sm:$0xff]  ;;  %v56_v50 = vld [vmem:[%s2436_s1 + $0x18] sm:$0xff] }
   0xe   :  { %v57_v51 = vld [vmem:[%s2436_s1 + $0x20] sm:$0xff]  ;;  %v58_v52 = vld [vmem:[%s2436_s1 + $0x28] sm:$0xff]  ;;  %v59_v53 = vld [vmem:[%s2436_s1 + $0x30] sm:$0xff] }
   0xf   :  { %v60_v54 = vld [vmem:[%s2436_s1 + $0x38] sm:$0xff]  ;;  %v418_v56 = vld [vmem:[%s2437_s0] sm:$0xff] }
  0x10   :  { %1556 = vmatmul.mubr.msk.f32.gmra.mrb[4].mxu1 %vm69_vm1, %v63_v28  ;;  %1637 = vmatpush1.bf16.msra.mxu0 %v2014_v38  ;;  %v344_v7 = vld [vmem:[%s2438_s4] sm:$0x3]  ;;  %v417_v28 = vsel %vm393_vm2, 7, %v1850_v55 }
  0x11   :  { %176 = vmatprep.mubr.f32.mxu1 %v1848_v3  ;;  %1639 = vmatprep.subr.bf16.mxu0 %v2016_v39  ;;  %v2140_v10 = vrot.slane %v344_v7, %v348_v6  ;;  %v2143_v15 = vrot.slane %v344_v7, %v352_v11 }
  0x12   :  { %420 = vperm.xlu1 %1782, %v418_v56  }
  0x14   :  { %1557 = vmatmul.mubr.msk.f32.gmra.mrb[6].mxu1 %vm69_vm1, %v64_v37  ;;  %1641 = vmatpush1.bf16.msra.mxu0 %v2031_v43  ;;  %v411_v37 = vsel %vm393_vm2, 1, %v1852_v36 }
  0x15   :  { %182 = vmatprep.mubr.f32.mxu1 %v1848_v3  ;;  %1643 = vmatprep.subr.bf16.mxu0 %v1946_v18 }
  0x18   :  { %1558 = vmatmul.mubr.msk.f32.gmra.mrb[8].mxu1 %vm69_vm1, %v65_v42  ;;  %v1854_v42 = vmov 4  }
  0x19   :  { %188 = vmatprep.mubr.f32.mxu1 %v1848_v3 }
  0x1c   :  { %1559 = vmatmul.mubr.msk.f32.gmra.mrb[10].mxu1 %vm69_vm1, %v66_v44  ;;  %v413_v44 = vsel %vm393_vm2, 3, %v1854_v42 }
  0x1d   :  { %194 = vmatprep.mubr.f32.mxu1 %v1848_v3 }
  0x20   :  { %1560 = vmatmul.mubr.msk.f32.gmra.mrb[12].mxu1 %vm69_vm1, %v67_v45  ;;  %v1855_v45 = vmov 3  }
  0x21   :  { %200 = vmatprep.mubr.f32.mxu1 %v1848_v3 }
  0x24   :  { %1561 = vmatmul.mubr.msk.f32.gmra.mrb[14].mxu1 %vm69_vm1, %v68_v46  ;;  %v414_v46 = vsel %vm393_vm2, 4, %v1855_v45 }
  0x25   :  { %295 = vmatprep.mubr.f32.mxu1 %v1848_v3 }
  0x28   :  { %1562 = vmatmul.mubr.msk.f32.vlgmr.msra.gmra.mrb[0].mxu1 %vm69_vm1, %v53_v47  ;;  %v1856_v47 = vmov 2  }
  0x29   :  { %1597 = vmatpush1.bf16.msra.mxu1 %v1955_v21  ;;  %301 = vmatprep.mubr.f32.mxu1 %v1848_v3 }
  0x2a   :  { %1599 = vmatprep.subr.bf16.mxu1 %v1961_v23 }
  0x2c   :  { %1563 = vmatmul.mubr.msk.f32.gmra.mrb[2].mxu1 %vm69_vm1, %v54_v48  ;;  %v415_v48 = vsel %vm393_vm2, 5, %v1856_v47 }
  0x2d   :  { %307 = vmatprep.mubr.f32.mxu1 %v1848_v3  ;;  %1601 = vmatpush1.bf16.msra.mxu1 %v1983_v29 }
  0x2e   :  { %1603 = vmatprep.subr.bf16.mxu1 %v1989_v32 }
  0x30   :  { %1564 = vmatmul.mubr.msk.f32.gmra.mrb[4].mxu1 %vm69_vm1, %v55_v49  ;;  %v1857_v49 = vmov 1  }
  0x31   :  { %313 = vmatprep.mubr.f32.mxu1 %v1848_v3  ;;  %1605 = vmatpush1.bf16.msra.mxu1 %v2014_v38 }
  0x32   :  { %1607 = vmatprep.subr.bf16.mxu1 %v2016_v39 }
  0x34   :  { %1565 = vmatmul.mubr.msk.f32.gmra.mrb[6].mxu1 %vm69_vm1, %v56_v50  ;;  %v416_v50 = vsel %vm393_vm2, 6, %v1857_v49 }
  0x35   :  { %319 = vmatprep.mubr.f32.mxu1 %v1848_v3  ;;  %1609 = vmatpush1.bf16.msra.mxu1 %v2031_v43 }
  0x36   :  { %1611 = vmatprep.subr.bf16.mxu1 %v1946_v18 }
  0x38   :  { %1566 = vmatmul.mubr.msk.f32.gmra.mrb[8].mxu1 %vm69_vm1, %v57_v51 }
  0x39   :  { %325 = vmatprep.mubr.f32.mxu1 %v1848_v3 }
  0x3c   :  { %1567 = vmatmul.mubr.msk.f32.gmra.mrb[10].mxu1 %vm69_vm1, %v58_v52 }
  0x3d   :  { %331 = vmatprep.mubr.f32.mxu1 %v1848_v3 }
  0x40   :  { %1568 = vmatmul.mubr.msk.f32.gmra.mrb[12].mxu1 %vm69_vm1, %v59_v53 }
  0x41   :  { %337 = vmatprep.mubr.f32.mxu1 %v1848_v3 }
  0x44   :  { %1569 = vmatmul.mubr.msk.f32.gmra.mrb[14].mxu1 %vm69_vm1, %v60_v54 }
  0x45   :  { %542 = vmatprep.mubr.f32.mxu1 %v1848_v3 }
  0x48   :  { %1578 = vmatmul.mubr.msk.f32.vlgmr.msra.gmra.mrb[0].mxu1 %vm42_vm0, %v1985_v30 }
  0x49   :  { %1613 = vmatpush1.bf16.msra.mxu1 %v1955_v21  ;;  %674 = vmatprep.mubr.f32.mxu1 %v1848_v3 }
  0x4a   :  { %1615 = vmatprep.subr.bf16.mxu1 %v1961_v23 }
  0x4d   :  { %1617 = vmatpush1.bf16.msra.mxu1 %v1983_v29 }
  0x4e   :  { %1619 = vmatprep.subr.bf16.mxu1 %v1989_v32 }
  0x51   :  { %1621 = vmatpush1.bf16.msra.mxu1 %v2014_v38 }
  0x52   :  { %1623 = vmatprep.subr.bf16.mxu1 %v2016_v39 }
  0x55   :  { %1625 = vmatpush1.bf16.msra.mxu1 %v2031_v43 }
  0x7d   :  { %v588_v27 = vpop.permute.xlu1 %587  ;;  %v562_v7 = vpop.permute.xlu0 %561 }
  0x91   :  { %v421_v33 = vpop.permute.xlu1 %420 }
  0x92   :  { %vm422_vm3 = vcmp.lt.s32.totalorder %v410_v35, %v421_v33  ;;  %vm423_vm4 = vcmp.lt.s32.totalorder %v411_v37, %v421_v33  ;;  %vm424_vm5 = vcmp.lt.s32.totalorder %v412_v41, %v421_v33  ;;  %vm425_vm6 = vcmp.lt.s32.totalorder %v413_v44, %v421_v33 }
  0x93   :  { %vm426_vm7 = vcmp.lt.s32.totalorder %v414_v46, %v421_v33  ;;  %vm427_vm8 = vcmp.lt.s32.totalorder %v415_v48, %v421_v33  ;;  %vm428_vm9 = vcmp.lt.s32.totalorder %v416_v50, %v421_v33  ;;  %vm429_vm10 = vcmp.lt.s32.totalorder %v417_v28, %v421_v33 }
  0x94   :  { %v1570_v51 = vsel %vm422_vm3, 1.0, %v1848_v3  ;;  %v1571_v52 = vsel %vm423_vm4, 1.0, %v1848_v3  ;;  %v1572_v53 = vsel %vm424_vm5, 1.0, %v1848_v3  ;;  %v1573_v54 = vsel %vm425_vm6, 1.0, %v1848_v3 }
  0x95   :  { %v1574_v55 = vsel %vm426_vm7, 1.0, %v1848_v3  ;;  %v1575_v56 = vsel %vm427_vm8, 1.0, %v1848_v3  ;;  %447 = vst.msk [vmem:[#allocation5] sm:$0xff] %vm42_vm0, %v1570_v51  ;;  %448 = vst.msk [vmem:[#allocation5 + $0x8] sm:$0xff] %vm42_vm0, %v1571_v52  ;;  %v1576_v63 = vsel %vm428_vm9, 1.0, %v1848_v3  ;;  %v1577_v2 = vsel %vm429_vm10, 1.0, %v1848_v3 }
  0x96   :  { %449 = vst.msk [vmem:[#allocation5 + $0x10] sm:$0xff] %vm42_vm0, %v1572_v53  ;;  %450 = vst.msk [vmem:[#allocation5 + $0x18] sm:$0xff] %vm42_vm0, %v1573_v54 }
  0x97   :  { %451 = vst.msk [vmem:[#allocation5 + $0x20] sm:$0xff] %vm42_vm0, %v1574_v55  ;;  %452 = vst.msk [vmem:[#allocation5 + $0x28] sm:$0xff] %vm42_vm0, %v1575_v56 }
  0x98   :  { %453 = vst.msk [vmem:[#allocation5 + $0x30] sm:$0xff] %vm42_vm0, %v1576_v63  ;;  %454 = vst.msk [vmem:[#allocation5 + $0x38] sm:$0xff] %vm42_vm0, %v1577_v2 }
 0x103   :  { %v2113_v57 = vpop.f32.mrb[4].mxu1 }
 0x104   :  { %v2115_v58 = vpop.f32.mrb[5].mxu1 }
 0x107   :  { %v2117_v59 = vpop.f32.mrb[6].mxu1 }
 0x108   :  { %v2119_v60 = vpop.f32.mrb[7].mxu1 }
 0x10b   :  { %v2121_v61 = vpop.f32.mrb[8].mxu1 }
 0x10c   :  { %v2123_v62 = vpop.f32.mrb[9].mxu1 }
 0x10f   :  { %v2125_v0 = vpop.f32.mrb[10].mxu1 }
 0x110   :  { %v2127_v1 = vpop.f32.mrb[11].mxu1 }
 0x113   :  { %v2129_v4 = vpop.f32.mrb[12].mxu1 }
 0x114   :  { %v2131_v5 = vpop.f32.mrb[13].mxu1 }
 0x117   :  { %v2136_v8 = vpop.f32.mrb[14].mxu1 }
 0x118   :  { %v2138_v9 = vpop.f32.mrb[15].mxu1 }
 0x11b   :  { %v544_v12 = vpop.f32.mrb[0].mxu1 }
 0x11c   :  { %v1722_v13 = vadd.f32 %v544_v12, %v2140_v10  ;;  %v546_v14 = vpop.f32.mrb[1].mxu1 }
 0x11d   :  { %v1723_v17 = vadd.f32 %v546_v14, %v2143_v15 }
 0x11e   :  { %v551_v16 = vmul.f32 0.5, %v1722_v13 }
 0x11f   :  { %v556_v6 = vmul.f32 0.5, %v1723_v17 }
 0x120   :  { %1784 = vtanh.f32 %v551_v16 }
 0x121   :  { %1786 = vtanh.f32 %v1723_v17  ;;  %v2176_v17 = vld [vmem:[#allocation5] sm:$0xff] }
 0x122   :  { %1788 = vtanh.f32 %v556_v6 }
 0x12a   :  { %v1785_v19 = vpop.eup %1784 }
 0x12b   :  { %v553_v20 = vadd.f32 1.0, %v1785_v19  ;;  %v1787_v24 = vpop.eup %1786 }
 0x12c   :  { %v1789_v16 = vpop.eup %1788 }
 0x12d   :  { %v554_v22 = vmul.f32 0.5, %v553_v20  ;;  %v558_v19 = vadd.f32 1.0, %v1789_v16 }
 0x12f   :  { %v565_v25 = vmul.f32 %v1787_v24, %v554_v22  ;;  %v564_v11 = vmul.f32 %v562_v7, %v554_v22  ;;  %v559_v20 = vmul.f32 0.5, %v558_v19 }
 0x131   :  { %567 = vrot.lane.b32.xlu0 %v565_v25, %s1849_s23 }
 0x1a3   :  { %v568_v12 = vpop.permute.xlu0 %567 }
 0x1a4   :  { %v570_v13 = vadd.f32 %v568_v12, %v564_v11 }
 0x1a6   :  { %1790 = vtanh.f32 %v570_v13  ;;  %v597_v14 = vsub.f32 %v570_v13, %v562_v7  ;;  %v2193_v7 = vld [vmem:[#allocation5 + $0x8] sm:$0xff] }
 0x1a8   :  { %599 = vrot.lane.b32.xlu1 %v597_v14, %s1849_s23 }
 0x1b0   :  { %v1791_v24 = vpop.eup %1790 }
 0x1b1   :  { %v2172_v25 = vmul.f32 %v1791_v24, %v559_v20  ;;  %v1726_v20 = vadd.f32 %v2140_v10, %v2113_v57  ;;  %v1728_v24 = vadd.f32 %v2143_v15, %v2115_v58 }
 0x1b3   :  { %v590_v26 = vsub.f32 %v2172_v25, %v588_v27 }
 0x1b5   :  { %592 = vrot.lane.b32.xlu0 %v590_v26, %s1849_s23 }
 0x21a   :  { %v600_v28 = vpop.permute.xlu1 %599 }
 0x21b   :  { %v602_v22 = vmul.f32 %v600_v28, %v2176_v17 }
 0x21d   :  { %v603_v33 = vadd.f32 %v602_v22, %v1987_v31 }
 0x21f   :  { %693 = vrot.lane.b32.xlu0 %v603_v33, %s1849_s23 }
 0x227   :  { %v593_v34 = vpop.permute.xlu0 %592 }
 0x228   :  { %v595_v35 = vmul.f32 %v593_v34, %v2176_v17 }
 0x22a   :  { %v596_v36 = vadd.f32 %v595_v35, %v1985_v30 }
 0x22c   :  { %1579 = vmatmul.mubr.msk.f32.vlgmr.msra.gmra.mrb[2].mxu1 %vm42_vm0, %v596_v36  ;;  %720 = vrot.lane.b32.xlu0 %v596_v36, %s1849_s23 }
 0x291   :  { %v694_v48 = vpop.permute.xlu0 %693 }
 0x29e   :  { %v721_v2 = vpop.permute.xlu0 %720 }
 0x2ff   :  { %v676_v27 = vpop.f32.mrb[2].mxu1 }
 0x300   :  { %v1724_v37 = vadd.f32 %v676_v27, %v2140_v10  ;;  %v678_v40 = vpop.f32.mrb[3].mxu1 }
 0x301   :  { %v1725_v42 = vadd.f32 %v678_v40, %v2143_v15 }
 0x302   :  { %v683_v41 = vmul.f32 0.5, %v1724_v37 }
 0x303   :  { %v688_v30 = vmul.f32 0.5, %v1725_v42 }
 0x304   :  { %1792 = vtanh.f32 %v683_v41 }
 0x305   :  { %1794 = vtanh.f32 %v1725_v42 }
 0x306   :  { %1796 = vtanh.f32 %v688_v30 }
 0x30e   :  { %v1793_v31 = vpop.eup %1792 }
 0x30f   :  { %v685_v44 = vadd.f32 1.0, %v1793_v31  ;;  %v1795_v46 = vpop.eup %1794 }
 0x310   :  { %v1797_v53 = vpop.eup %1796 }
 0x311   :  { %v686_v45 = vmul.f32 0.5, %v685_v44  ;;  %v690_v54 = vadd.f32 1.0, %v1797_v53 }
 0x313   :  { %v697_v47 = vmul.f32 %v1795_v46, %v686_v45  ;;  %v696_v49 = vmul.f32 %v694_v48, %v686_v45  ;;  %v691_v55 = vmul.f32 0.5, %v690_v54 }
 0x315   :  { %699 = vrot.lane.b32.xlu1 %v697_v47, %s1849_s23 }
 0x387   :  { %v700_v50 = vpop.permute.xlu1 %699 }
 0x388   :  { %v702_v51 = vadd.f32 %v700_v50, %v696_v49 }
 0x38a   :  { %1798 = vtanh.f32 %v702_v51  ;;  %v730_v52 = vsub.f32 %v702_v51, %v694_v48  ;;  %v2219_v51 = vld [vmem:[#allocation5 + $0x10] sm:$0xff] }
 0x38c   :  { %732 = vrot.lane.b32.xlu0 %v730_v52, %s1849_s23 }
 0x394   :  { %v1799_v56 = vpop.eup %1798 }
 0x395   :  { %v2189_v63 = vmul.f32 %v1799_v56, %v691_v55 }
 0x397   :  { %v723_v6 = vsub.f32 %v2189_v63, %v721_v2 }
 0x399   :  { %725 = vrot.lane.b32.xlu1 %v723_v6, %s1849_s23  ;;  %v1730_v6 = vadd.f32 %v2140_v10, %v2117_v59 }
 0x3fe   :  { %v733_v11 = vpop.permute.xlu0 %732 }
 0x3ff   :  { %v735_v12 = vmul.f32 %v733_v11, %v2193_v7  ;;  %v1732_v11 = vadd.f32 %v2143_v15, %v2119_v60 }
 0x401   :  { %v736_v13 = vadd.f32 %v735_v12, %v603_v33 }
 0x403   :  { %826 = vrot.lane.b32.xlu1 %v736_v13, %s1849_s23 }
 0x40b   :  { %v726_v14 = vpop.permute.xlu1 %725 }
 0x40c   :  { %v728_v16 = vmul.f32 %v726_v14, %v2193_v7 }
 0x40e   :  { %v729_v19 = vadd.f32 %v728_v16, %v596_v36 }
 0x410   :  { %851 = vrot.lane.b32.xlu1 %v729_v19, %s1849_s23  ;;  %1580 = vmatmul.mubr.msk.f32.vlgmr.msra.gmra.mrb[0].mxu0 %vm42_vm0, %v729_v19 }
 0x411   :  { %1645 = vmatpush1.bf16.msra.mxu0 %v1955_v21  ;;  %938 = vmatprep.mubr.f32.mxu0 %v1848_v3 }
 0x412   :  { %1647 = vmatprep.subr.bf16.mxu0 %v1961_v23 }
 0x415   :  { %1649 = vmatpush1.bf16.msra.mxu0 %v1983_v29 }
 0x416   :  { %1651 = vmatprep.subr.bf16.mxu0 %v1989_v32 }
 0x419   :  { %1653 = vmatpush1.bf16.msra.mxu0 %v2014_v38 }
 0x41a   :  { %1655 = vmatprep.subr.bf16.mxu0 %v2016_v39 }
 0x41d   :  { %1657 = vmatpush1.bf16.msra.mxu0 %v2031_v43 }
 0x41e   :  { %1659 = vmatprep.subr.bf16.mxu0 %v1946_v18 }
 0x475   :  { %v827_v57 = vpop.permute.xlu1 %826 }
 0x482   :  { %v852_v49 = vpop.permute.xlu1 %851 }
 0x4e3   :  { %v809_v26 = vpop.f32.mrb[0].mxu0 }
 0x4e4   :  { %v1727_v28 = vadd.f32 %v1726_v20, %v809_v26  ;;  %v811_v22 = vpop.f32.mrb[1].mxu0 }
 0x4e5   :  { %v1729_v33 = vadd.f32 %v1728_v24, %v811_v22 }
 0x4e6   :  { %v816_v34 = vmul.f32 0.5, %v1727_v28 }
 0x4e7   :  { %v821_v41 = vmul.f32 0.5, %v1729_v33 }
 0x4e8   :  { %1800 = vtanh.f32 %v816_v34 }
 0x4e9   :  { %1802 = vtanh.f32 %v1729_v33 }
 0x4ea   :  { %1804 = vtanh.f32 %v821_v41 }
 0x4f2   :  { %v1801_v35 = vpop.eup %1800 }
 0x4f3   :  { %v818_v36 = vadd.f32 1.0, %v1801_v35  ;;  %v1803_v37 = vpop.eup %1802 }
 0x4f4   :  { %v1805_v45 = vpop.eup %1804 }
 0x4f5   :  { %v819_v27 = vmul.f32 0.5, %v818_v36  ;;  %v823_v46 = vadd.f32 1.0, %v1805_v45 }
 0x4f7   :  { %v830_v40 = vmul.f32 %v1803_v37, %v819_v27  ;;  %v829_v42 = vmul.f32 %v827_v57, %v819_v27  ;;  %v824_v47 = vmul.f32 0.5, %v823_v46 }
 0x4f9   :  { %832 = vrot.lane.b32.xlu0 %v830_v40, %s1849_s23 }
 0x56b   :  { %v833_v31 = vpop.permute.xlu0 %832 }
 0x56c   :  { %v835_v58 = vadd.f32 %v833_v31, %v829_v42 }
 0x56e   :  { %1806 = vtanh.f32 %v835_v58  ;;  %v861_v44 = vsub.f32 %v835_v58, %v827_v57  ;;  %v2245_v58 = vld [vmem:[#allocation5 + $0x18] sm:$0xff] }
 0x570   :  { %863 = vrot.lane.b32.xlu1 %v861_v44, %s1849_s23 }
 0x578   :  { %v1807_v30 = vpop.eup %1806 }
 0x579   :  { %v2215_v48 = vmul.f32 %v1807_v30, %v824_v47 }
 0x57b   :  { %v854_v50 = vsub.f32 %v2215_v48, %v852_v49 }
 0x57d   :  { %856 = vrot.lane.b32.xlu0 %v854_v50, %s1849_s23  ;;  %v1734_v50 = vadd.f32 %v2140_v10, %v2121_v61 }
 0x5e2   :  { %v864_v52 = vpop.permute.xlu1 %863 }
 0x5e3   :  { %v866_v53 = vmul.f32 %v864_v52, %v2219_v51  ;;  %v1736_v52 = vadd.f32 %v2143_v15, %v2123_v62 }
 0x5e5   :  { %v867_v54 = vadd.f32 %v866_v53, %v736_v13 }
 0x5e7   :  { %957 = vrot.lane.b32.xlu0 %v867_v54, %s1849_s23 }
 0x5ef   :  { %v857_v55 = vpop.permute.xlu0 %856 }
 0x5f0   :  { %v859_v56 = vmul.f32 %v857_v55, %v2219_v51 }
 0x5f2   :  { %v860_v2 = vadd.f32 %v859_v56, %v729_v19 }
 0x5f4   :  { %1581 = vmatmul.mubr.msk.f32.vlgmr.msra.gmra.mrb[2].mxu0 %vm42_vm0, %v860_v2  ;;  %982 = vrot.lane.b32.xlu0 %v860_v2, %s1849_s23 }
 0x5f5   :  { %1661 = vmatpush1.bf16.msra.mxu0 %v1955_v21  ;;  %1069 = vmatprep.mubr.f32.mxu0 %v1848_v3 }
 0x5f6   :  { %1663 = vmatprep.subr.bf16.mxu0 %v1961_v23 }
 0x5f9   :  { %1665 = vmatpush1.bf16.msra.mxu0 %v1983_v29 }
 0x5fa   :  { %1667 = vmatprep.subr.bf16.mxu0 %v1989_v32 }
 0x5fd   :  { %1669 = vmatpush1.bf16.msra.mxu0 %v2014_v38 }
 0x5fe   :  { %1671 = vmatprep.subr.bf16.mxu0 %v2016_v39 }
 0x601   :  { %1673 = vmatpush1.bf16.msra.mxu0 %v2031_v43 }
 0x602   :  { %1675 = vmatprep.subr.bf16.mxu0 %v1946_v18 }
 0x659   :  { %v958_v59 = vpop.permute.xlu0 %957 }
 0x666   :  { %v983_v42 = vpop.permute.xlu0 %982 }
 0x6c7   :  { %v940_v12 = vpop.f32.mrb[2].mxu0 }
 0x6c8   :  { %v1731_v13 = vadd.f32 %v1730_v6, %v940_v12  ;;  %v942_v14 = vpop.f32.mrb[3].mxu0 }
 0x6c9   :  { %v1733_v16 = vadd.f32 %v1732_v11, %v942_v14 }
 0x6ca   :  { %v947_v19 = vmul.f32 0.5, %v1731_v13 }
 0x6cb   :  { %v952_v33 = vmul.f32 0.5, %v1733_v16 }
 0x6cc   :  { %1808 = vtanh.f32 %v947_v19 }
 0x6cd   :  { %1810 = vtanh.f32 %v1733_v16 }
 0x6ce   :  { %1812 = vtanh.f32 %v952_v33 }
 0x6d6   :  { %v1809_v20 = vpop.eup %1808 }
 0x6d7   :  { %v949_v24 = vadd.f32 1.0, %v1809_v20  ;;  %v1811_v28 = vpop.eup %1810 }
 0x6d8   :  { %v1813_v27 = vpop.eup %1812 }
 0x6d9   :  { %v950_v26 = vmul.f32 0.5, %v949_v24  ;;  %v954_v37 = vadd.f32 1.0, %v1813_v27 }
 0x6db   :  { %v961_v22 = vmul.f32 %v1811_v28, %v950_v26  ;;  %v960_v34 = vmul.f32 %v958_v59, %v950_v26  ;;  %v955_v40 = vmul.f32 0.5, %v954_v37 }
 0x6dd   :  { %963 = vrot.lane.b32.xlu1 %v961_v22, %s1849_s23 }
 0x74f   :  { %v964_v35 = vpop.permute.xlu1 %963 }
 0x750   :  { %v966_v60 = vadd.f32 %v964_v35, %v960_v34 }
 0x752   :  { %1814 = vtanh.f32 %v966_v60  ;;  %v992_v36 = vsub.f32 %v966_v60, %v958_v59  ;;  %v2271_v60 = vld [vmem:[#allocation5 + $0x20] sm:$0xff] }
 0x754   :  { %994 = vrot.lane.b32.xlu0 %v992_v36, %s1849_s23 }
 0x75c   :  { %v1815_v41 = vpop.eup %1814 }
 0x75d   :  { %v2241_v57 = vmul.f32 %v1815_v41, %v955_v40 }
 0x75f   :  { %v985_v31 = vsub.f32 %v2241_v57, %v983_v42 }
 0x761   :  { %987 = vrot.lane.b32.xlu1 %v985_v31, %s1849_s23  ;;  %v1738_v31 = vadd.f32 %v2140_v10, %v2125_v0 }
 0x7c6   :  { %v995_v44 = vpop.permute.xlu0 %994 }
 0x7c7   :  { %v997_v45 = vmul.f32 %v995_v44, %v2245_v58  ;;  %v1740_v44 = vadd.f32 %v2143_v15, %v2127_v1 }
 0x7c9   :  { %v998_v46 = vadd.f32 %v997_v45, %v867_v54 }
 0x7cb   :  { %1088 = vrot.lane.b32.xlu1 %v998_v46, %s1849_s23 }
 0x7d3   :  { %v988_v47 = vpop.permute.xlu1 %987 }
 0x7d4   :  { %v990_v30 = vmul.f32 %v988_v47, %v2245_v58 }
 0x7d6   :  { %v991_v49 = vadd.f32 %v990_v30, %v860_v2 }
 0x7d8   :  { %1113 = vrot.lane.b32.xlu1 %v991_v49, %s1849_s23  ;;  %1582 = vmatmul.mubr.msk.f32.vlgmr.msra.gmra.mrb[4].mxu0 %vm42_vm0, %v991_v49 }
 0x7d9   :  { %1677 = vmatpush1.bf16.msra.mxu0 %v1955_v21  ;;  %1200 = vmatprep.mubr.f32.mxu0 %v1848_v3 }
 0x7da   :  { %1679 = vmatprep.subr.bf16.mxu0 %v1961_v23 }
 0x7dd   :  { %1681 = vmatpush1.bf16.msra.mxu0 %v1983_v29 }
 0x7de   :  { %1683 = vmatprep.subr.bf16.mxu0 %v1989_v32 }
 0x7e1   :  { %1685 = vmatpush1.bf16.msra.mxu0 %v2014_v38 }
 0x7e2   :  { %1687 = vmatprep.subr.bf16.mxu0 %v2016_v39 }
 0x7e5   :  { %1689 = vmatpush1.bf16.msra.mxu0 %v2031_v43 }
 0x7e6   :  { %1691 = vmatprep.subr.bf16.mxu0 %v1946_v18 }
 0x83d   :  { %v1089_v61 = vpop.permute.xlu1 %1088 }
 0x84a   :  { %v1114_v34 = vpop.permute.xlu1 %1113 }
 0x8ab   :  { %v1071_v53 = vpop.f32.mrb[4].mxu0 }
 0x8ac   :  { %v1735_v54 = vadd.f32 %v1734_v50, %v1071_v53  ;;  %v1073_v55 = vpop.f32.mrb[5].mxu0 }
 0x8ad   :  { %v1737_v56 = vadd.f32 %v1736_v52, %v1073_v55 }
 0x8ae   :  { %v1078_v2 = vmul.f32 0.5, %v1735_v54 }
 0x8af   :  { %v1083_v16 = vmul.f32 0.5, %v1737_v56 }
 0x8b0   :  { %1816 = vtanh.f32 %v1078_v2 }
 0x8b1   :  { %1818 = vtanh.f32 %v1737_v56 }
 0x8b2   :  { %1820 = vtanh.f32 %v1083_v16 }
 0x8ba   :  { %v1817_v6 = vpop.eup %1816 }
 0x8bb   :  { %v1080_v11 = vadd.f32 1.0, %v1817_v6  ;;  %v1819_v13 = vpop.eup %1818 }
 0x8bc   :  { %v1821_v26 = vpop.eup %1820 }
 0x8bd   :  { %v1081_v12 = vmul.f32 0.5, %v1080_v11  ;;  %v1085_v28 = vadd.f32 1.0, %v1821_v26 }
 0x8bf   :  { %v1092_v14 = vmul.f32 %v1819_v13, %v1081_v12  ;;  %v1091_v19 = vmul.f32 %v1089_v61, %v1081_v12  ;;  %v1086_v22 = vmul.f32 0.5, %v1085_v28 }
 0x8c1   :  { %1094 = vrot.lane.b32.xlu0 %v1092_v14, %s1849_s23 }
 0x933   :  { %v1095_v20 = vpop.permute.xlu0 %1094 }
 0x934   :  { %v1097_v62 = vadd.f32 %v1095_v20, %v1091_v19  ;;  %v2297_v20 = vld [vmem:[#allocation5 + $0x28] sm:$0xff] }
 0x936   :  { %1822 = vtanh.f32 %v1097_v62  ;;  %v1123_v24 = vsub.f32 %v1097_v62, %v1089_v61 }
 0x938   :  { %1125 = vrot.lane.b32.xlu1 %v1123_v24, %s1849_s23 }
 0x940   :  { %v1823_v33 = vpop.eup %1822 }
 0x941   :  { %v2267_v59 = vmul.f32 %v1823_v33, %v1086_v22 }
 0x943   :  { %v1116_v35 = vsub.f32 %v2267_v59, %v1114_v34  ;;  %v1742_v34 = vadd.f32 %v2140_v10, %v2129_v4 }
 0x945   :  { %1118 = vrot.lane.b32.xlu0 %v1116_v35, %s1849_s23 }
 0x9aa   :  { %v1126_v36 = vpop.permute.xlu1 %1125 }
 0x9ab   :  { %v1128_v27 = vmul.f32 %v1126_v36, %v2271_v60 }
 0x9ad   :  { %v1129_v37 = vadd.f32 %v1128_v27, %v998_v46 }
 0x9af   :  { %1219 = vrot.lane.b32.xlu0 %v1129_v37, %s1849_s23 }
 0x9b7   :  { %v1119_v40 = vpop.permute.xlu0 %1118 }
 0x9b8   :  { %v1121_v41 = vmul.f32 %v1119_v40, %v2271_v60 }
 0x9ba   :  { %v1122_v42 = vadd.f32 %v1121_v41, %v991_v49 }
 0x9bc   :  { %1583 = vmatmul.mubr.msk.f32.vlgmr.msra.gmra.mrb[6].mxu0 %vm42_vm0, %v1122_v42  ;;  %1244 = vrot.lane.b32.xlu0 %v1122_v42, %s1849_s23 }
 0x9bd   :  { %1693 = vmatpush1.bf16.msra.mxu0 %v1955_v21  ;;  %1331 = vmatprep.mubr.f32.mxu0 %v1848_v3 }
 0x9be   :  { %1695 = vmatprep.subr.bf16.mxu0 %v1961_v23 }
 0x9c1   :  { %1697 = vmatpush1.bf16.msra.mxu0 %v1983_v29 }
 0x9c2   :  { %1699 = vmatprep.subr.bf16.mxu0 %v1989_v32 }
 0x9c5   :  { %1701 = vmatpush1.bf16.msra.mxu0 %v2014_v38 }
 0x9c6   :  { %1703 = vmatprep.subr.bf16.mxu0 %v2016_v39 }
 0x9c9   :  { %1705 = vmatpush1.bf16.msra.mxu0 %v2031_v43 }
 0x9ca   :  { %1707 = vmatprep.subr.bf16.mxu0 %v1946_v18 }
 0xa21   :  { %v1220_v0 = vpop.permute.xlu0 %1219 }
 0xa2e   :  { %v1245_v61 = vpop.permute.xlu0 %1244 }
 0xa8f   :  { %v1202_v45 = vpop.f32.mrb[6].mxu0 }
 0xa90   :  { %v1739_v46 = vadd.f32 %v1738_v31, %v1202_v45  ;;  %v1204_v47 = vpop.f32.mrb[7].mxu0 }
 0xa91   :  { %v1741_v30 = vadd.f32 %v1740_v44, %v1204_v47 }
 0xa92   :  { %v1209_v49 = vmul.f32 0.5, %v1739_v46 }
 0xa93   :  { %v1214_v18 = vmul.f32 0.5, %v1741_v30 }
 0xa94   :  { %1824 = vtanh.f32 %v1209_v49 }
 0xa95   :  { %1826 = vtanh.f32 %v1741_v30 }
 0xa96   :  { %1828 = vtanh.f32 %v1214_v18 }
 0xa9e   :  { %v1825_v50 = vpop.eup %1824 }
 0xa9f   :  { %v1211_v52 = vadd.f32 1.0, %v1825_v50  ;;  %v1827_v54 = vpop.eup %1826  ;;  %v2319_v50 = vld [vmem:[#allocation5 + $0x30] sm:$0xff] }
 0xaa0   :  { %v1829_v11 = vpop.eup %1828 }
 0xaa1   :  { %v1212_v53 = vmul.f32 0.5, %v1211_v52  ;;  %v1216_v12 = vadd.f32 1.0, %v1829_v11  ;;  %v1746_v11 = vadd.f32 %v2140_v10, %v2136_v8 }
 0xaa3   :  { %v1223_v55 = vmul.f32 %v1827_v54, %v1212_v53  ;;  %v1222_v56 = vmul.f32 %v1220_v0, %v1212_v53  ;;  %v1217_v13 = vmul.f32 0.5, %v1216_v12 }
 0xaa5   :  { %1225 = vrot.lane.b32.xlu1 %v1223_v55, %s1849_s23 }
 0xb17   :  { %v1226_v2 = vpop.permute.xlu1 %1225 }
 0xb18   :  { %v1228_v1 = vadd.f32 %v1226_v2, %v1222_v56 }
 0xb1a   :  { %1830 = vtanh.f32 %v1228_v1  ;;  %v1254_v6 = vsub.f32 %v1228_v1, %v1220_v0 }
 0xb1c   :  { %1256 = vrot.lane.b32.xlu0 %v1254_v6, %s1849_s23 }
 0xb24   :  { %v1831_v14 = vpop.eup %1830 }
 0xb25   :  { %v2293_v16 = vmul.f32 %v1831_v14, %v1217_v13 }
 0xb27   :  { %v1247_v19 = vsub.f32 %v2293_v16, %v1245_v61 }
 0xb29   :  { %1249 = vrot.lane.b32.xlu1 %v1247_v19, %s1849_s23 }
 0xb8e   :  { %v1257_v62 = vpop.permute.xlu0 %1256 }
 0xb8f   :  { %v1259_v24 = vmul.f32 %v1257_v62, %v2297_v20 }
 0xb91   :  { %v1260_v26 = vadd.f32 %v1259_v24, %v1129_v37 }
 0xb93   :  { %1350 = vrot.lane.b32.xlu1 %v1260_v26, %s1849_s23 }
 0xb9b   :  { %v1250_v28 = vpop.permute.xlu1 %1249 }
 0xb9c   :  { %v1252_v22 = vmul.f32 %v1250_v28, %v2297_v20 }
 0xb9e   :  { %v1253_v33 = vadd.f32 %v1252_v22, %v1122_v42 }
 0xba0   :  { %1375 = vrot.lane.b32.xlu1 %v1253_v33, %s1849_s23  ;;  %1584 = vmatmul.mubr.msk.f32.vlgmr.msra.gmra.mrb[8].mxu0 %vm42_vm0, %v1253_v33 }
 0xba1   :  { %1709 = vmatpush1.bf16.msra.mxu0 %v1955_v21  ;;  %1462 = vmatprep.mubr.f32.mxu0 %v1848_v3  ;;  %v1744_v21 = vadd.f32 %v2143_v15, %v2131_v5 }
 0xba2   :  { %1711 = vmatprep.subr.bf16.mxu0 %v1961_v23 }
 0xba5   :  { %1713 = vmatpush1.bf16.msra.mxu0 %v1983_v29 }
 0xba6   :  { %1715 = vmatprep.subr.bf16.mxu0 %v1989_v32 }
 0xba9   :  { %1717 = vmatpush1.bf16.msra.mxu0 %v2014_v38 }
 0xbaa   :  { %1719 = vmatprep.subr.bf16.mxu0 %v2016_v39 }
 0xbad   :  { %1721 = vmatpush1.bf16.msra.mxu0 %v2031_v43 }
 0xc05   :  { %v1351_v4 = vpop.permute.xlu1 %1350 }
 0xc12   :  { %v1376_v30 = vpop.permute.xlu1 %1375 }
 0xc73   :  { %v1333_v35 = vpop.f32.mrb[8].mxu0 }
 0xc74   :  { %v1743_v3 = vadd.f32 %v1742_v34, %v1333_v35  ;;  %v1335_v36 = vpop.f32.mrb[9].mxu0 }
 0xc75   :  { %v1745_v23 = vadd.f32 %v1744_v21, %v1335_v36 }
 0xc76   :  { %v1340_v27 = vmul.f32 0.5, %v1743_v3 }
 0xc77   :  { %v1345_v43 = vmul.f32 0.5, %v1745_v23 }
 0xc78   :  { %1832 = vtanh.f32 %v1340_v27 }
 0xc79   :  { %1834 = vtanh.f32 %v1745_v23 }
 0xc7a   :  { %1836 = vtanh.f32 %v1345_v43 }
 0xc82   :  { %v1833_v29 = vpop.eup %1832 }
 0xc83   :  { %v1342_v32 = vadd.f32 1.0, %v1833_v29  ;;  %v1835_v37 = vpop.eup %1834 }
 0xc84   :  { %v1837_v31 = vpop.eup %1836 }
 0xc85   :  { %v1343_v38 = vmul.f32 0.5, %v1342_v32  ;;  %v1347_v44 = vadd.f32 1.0, %v1837_v31 }
 0xc87   :  { %v1354_v39 = vmul.f32 %v1835_v37, %v1343_v38  ;;  %v1353_v40 = vmul.f32 %v1351_v4, %v1343_v38  ;;  %v1348_v45 = vmul.f32 0.5, %v1347_v44  ;;  %v1494_v37 = vld [vmem:[#allocation5 + $0x38] sm:$0xff] }
 0xc89   :  { %1356 = vrot.lane.b32.xlu0 %v1354_v39, %s1849_s23 }
 0xcfb   :  { %v1357_v41 = vpop.permute.xlu0 %1356 }
 0xcfc   :  { %v1359_v5 = vadd.f32 %v1357_v41, %v1353_v40 }
 0xcfe   :  { %1838 = vtanh.f32 %v1359_v5  ;;  %v1385_v42 = vsub.f32 %v1359_v5, %v1351_v4 }
 0xd00   :  { %1387 = vrot.lane.b32.xlu1 %v1385_v42, %s1849_s23 }
 0xd08   :  { %v1839_v46 = vpop.eup %1838 }
 0xd09   :  { %v1361_v47 = vmul.f32 %v1839_v46, %v1348_v45 }
 0xd0b   :  { %v1378_v49 = vsub.f32 %v1361_v47, %v1376_v30 }
 0xd0d   :  { %1380 = vrot.lane.b32.xlu0 %v1378_v49, %s1849_s23 }
 0xd72   :  { %v1388_v52 = vpop.permute.xlu1 %1387 }
 0xd73   :  { %v1390_v53 = vmul.f32 %v1388_v52, %v2319_v50 }
 0xd75   :  { %v2322_v54 = vadd.f32 %v1390_v53, %v1260_v26 }
 0xd77   :  { %1481 = vrot.lane.b32.xlu0 %v2322_v54, %s1849_s23 }
 0xd7f   :  { %v1381_v55 = vpop.permute.xlu0 %1380 }
 0xd80   :  { %v1383_v18 = vmul.f32 %v1381_v55, %v2319_v50 }
 0xd82   :  { %v2327_v0 = vadd.f32 %v1383_v18, %v1253_v33 }
 0xd84   :  { %1585 = vmatmul.mubr.msk.f32.vlgmr.msra.gmra.mrb[10].mxu0 %vm42_vm0, %v2327_v0  ;;  %1506 = vrot.lane.b32.xlu0 %v2327_v0, %s1849_s23 }
 0xd88   :  { %1103 = vrot.lane.b32.xlu0 %v2267_v59, %s1849_s23  ;;  %v1748_v59 = vadd.f32 %v2143_v15, %v2138_v9 }
 0xd8c   :  { %1234 = vrot.lane.b32.xlu0 %v2293_v16, %s1849_s23 }
 0xd90   :  { %1365 = vrot.lane.b32.xlu0 %v1361_v47, %s1849_s23 }
 0xde9   :  { %v1482_v56 = vpop.permute.xlu0 %1481 }
 0xdf6   :  { %v1507_v2 = vpop.permute.xlu0 %1506 }
 0xdfa   :  { %v1104_v1 = vpop.permute.xlu0 %1103 }
 0xdfb   :  { %v1106_v6 = vmul.f32 %v1104_v1, %v2271_v60 }
 0xdfd   :  { %1107 = vst.msk [vmem:[%s2439_s6 + $0x8] sm:$0xff] %vm579_vm11, %v1106_v6 }
 0xe57   :  { %v1464_v12 = vpop.f32.mrb[10].mxu0 }
 0xe58   :  { %v1747_v13 = vadd.f32 %v1746_v11, %v1464_v12  ;;  %v1466_v14 = vpop.f32.mrb[11].mxu0 }
 0xe59   :  { %v1749_v16 = vadd.f32 %v1748_v59, %v1466_v14 }
 0xe5a   :  { %v1471_v61 = vmul.f32 0.5, %v1747_v13 }
 0xe5b   :  { %v1476_v8 = vmul.f32 0.5, %v1749_v16 }
 0xe5c   :  { %1840 = vtanh.f32 %v1471_v61 }
 0xe5d   :  { %1842 = vtanh.f32 %v1749_v16 }
 0xe5e   :  { %1844 = vtanh.f32 %v1476_v8 }
 0xe66   :  { %v1841_v19 = vpop.eup %1840 }
 0xe67   :  { %v1473_v60 = vadd.f32 1.0, %v1841_v19  ;;  %v1843_v24 = vpop.eup %1842 }
 0xe68   :  { %v1845_v22 = vpop.eup %1844 }
 0xe69   :  { %v1474_v62 = vmul.f32 0.5, %v1473_v60 }
 0xe6b   :  { %v1485_v26 = vmul.f32 %v1843_v24, %v1474_v62  ;;  %v1484_v9 = vmul.f32 %v1482_v56, %v1474_v62 }
 0xe6d   :  { %1487 = vrot.lane.b32.xlu1 %v1485_v26, %s1849_s23 }
 0xe71   :  { %575 = vrot.lane.b32.xlu1 %v2172_v25, %s1849_s23  ;;  %v1478_v25 = vadd.f32 1.0, %v1845_v22 }
 0xe73   :  { %v1479_v34 = vmul.f32 0.5, %v1478_v25 }
 0xe75   :  { %708 = vrot.lane.b32.xlu1 %v2189_v63, %s1849_s23 }
 0xe79   :  { %841 = vrot.lane.b32.xlu1 %v2215_v48, %s1849_s23 }
 0xe7d   :  { %972 = vrot.lane.b32.xlu1 %v2241_v57, %s1849_s23 }
 0xedf   :  { %v1488_v10 = vpop.permute.xlu1 %1487 }
 0xee0   :  { %v1490_v15 = vadd.f32 %v1488_v10, %v1484_v9 }
 0xee2   :  { %1846 = vtanh.f32 %v1490_v15  ;;  %v1516_v36 = vsub.f32 %v1490_v15, %v1482_v56 }
 0xee3   :  { %v576_v28 = vpop.permute.xlu1 %575 }
 0xee4   :  { %v578_v33 = vmul.f32 %v576_v28, %v2176_v17 }
 0xee6   :  { %580 = vst.msk [vmem:[%s2439_s6] sm:$0xff] %vm579_vm11, %v578_v33  ;;  %582 = vrot.lane.b32.xlu1 %v578_v33, %s1849_s23 }
 0xee7   :  { %v709_v63 = vpop.permute.xlu1 %708 }
 0xee8   :  { %v711_v48 = vmul.f32 %v709_v63, %v2193_v7  ;;  %v1235_v7 = vpop.permute.xlu0 %1234 }
 0xeea   :  { %713 = vrot.lane.b32.xlu1 %v711_v48, %s1858_s13 }
 0xeeb   :  { %v842_v57 = vpop.permute.xlu1 %841 }
 0xeec   :  { %v1847_v21 = vpop.eup %1846  ;;  %v844_v35 = vmul.f32 %v842_v57, %v2219_v51  ;;  %v1237_v51 = vmul.f32 %v1235_v7, %v2297_v20  ;;  %v1366_v29 = vpop.permute.xlu0 %1365 }
 0xeed   :  { %v1492_v3 = vmul.f32 %v1847_v21, %v1479_v34  ;;  %v1368_v32 = vmul.f32 %v1366_v29, %v2319_v50 }
 0xeee   :  { %846 = vrot.lane.b32.xlu1 %v844_v35, %s1849_s23 }
 0xeef   :  { %1496 = vrot.lane.b32.xlu0 %v1492_v3, %s1849_s23  ;;  %v1509_v17 = vsub.f32 %v1492_v3, %v1507_v2  ;;  %v973_v23 = vpop.permute.xlu1 %972 }
 0xef0   :  { %v975_v27 = vmul.f32 %v973_v23, %v2245_v58 }
 0xef2   :  { %1511 = vrot.lane.b32.xlu1 %v1509_v17, %s1849_s23 }
 0xef3   :  { %1518 = vrot.lane.b32.xlu0 %v1516_v36, %s1849_s23 }
 0xef6   :  { %977 = vrot.lane.b32.xlu1 %v975_v27, %s1859_s14 }
 0xef7   :  { %1109 = vrot.lane.b32.xlu0 %v1106_v6, %s1849_s23 }
 0xefb   :  { %1239 = vrot.lane.b32.xlu0 %v1237_v51, %s1858_s13 }
 0xeff   :  { %1370 = vrot.lane.b32.xlu0 %v1368_v32, %s1849_s23 }
 0xf58   :  { %v583_v38 = vpop.permute.xlu1 %582 }
 0xf59   :  { %586 = vst.msk [vmem:[%s2440_s7 + $0x8] sm:$0xff] %vm585_vm12, %v583_v38 }
 0xf5c   :  { %v714_v58 = vpop.permute.xlu1 %713 }
 0xf5d   :  { %717 = vst.msk [vmem:[%s2439_s6] sm:$0xff] %vm716_vm13, %v714_v58 }
 0xf5e   :  { %719 = vst.msk [vmem:[%s2440_s7 + $0x8] sm:$0xff] %vm718_vm14, %v714_v58 }
 0xf5f   :  { %850 = vst.msk [vmem:[%s2440_s7 + $0x8] sm:$0xff] %vm716_vm13, %v844_v35 }
 0xf60   :  { %v847_v20 = vpop.permute.xlu1 %846 }
 0xf61   :  { %849 = vst.msk [vmem:[%s2439_s6] sm:$0xff] %vm718_vm14, %v847_v20  ;;  %v1497_v39 = vpop.permute.xlu0 %1496 }
 0xf62   :  { %v1499_v43 = vmul.f32 %v1497_v39, %v1494_v37 }
 0xf64   :  { %1501 = vrot.lane.b32.xlu0 %v1499_v43, %s1859_s14  ;;  %v1512_v4 = vpop.permute.xlu1 %1511 }
 0xf65   :  { %v1514_v40 = vmul.f32 %v1512_v4, %v1494_v37  ;;  %v1519_v41 = vpop.permute.xlu0 %1518 }
 0xf66   :  { %v1521_v5 = vmul.f32 %v1519_v41, %v1494_v37 }
 0xf67   :  { %v1515_v42 = vadd.f32 %v1514_v40, %v2327_v0 }
 0xf68   :  { %v1522_v31 = vadd.f32 %v1521_v5, %v2322_v54  ;;  %v978_v44 = vpop.permute.xlu1 %977 }
 0xf69   :  { %1523 = vst.msk [vmem:[#allocation2] sm:$0xff] %vm42_vm0, %v1515_v42  ;;  %v1110_v45 = vpop.permute.xlu0 %1109 }
 0xf6a   :  { %980 = vst.msk [vmem:[%s2439_s6] sm:$0xff] %vm585_vm12, %v978_v44  ;;  %1112 = vst.msk [vmem:[%s2440_s7] sm:$0xff] %vm585_vm12, %v1110_v45 }
 0xf6b   :  { %981 = vst.msk [vmem:[%s2440_s7 + $0x8] sm:$0xff] %vm579_vm11, %v978_v44 }
 0xf6c   :  { %1524 = vst.msk [vmem:[#allocation3] sm:$0xff] %vm42_vm0, %v1522_v31 }
 0xf6d   :  { %v1240_v46 = vpop.permute.xlu0 %1239 }
 0xf6e   :  { %1242 = vst.msk [vmem:[%s2439_s6 + $0x8] sm:$0xff] %vm716_vm13, %v1240_v46 }
 0xf6f   :  { %1243 = vst.msk [vmem:[%s2440_s7] sm:$0xff] %vm718_vm14, %v1240_v46 }
 0xf70   :  { %1374 = vst.msk [vmem:[%s2440_s7] sm:$0xff] %vm716_vm13, %v1368_v32 }
 0xf71   :  { %v1371_v47 = vpop.permute.xlu0 %1370 }
 0xf72   :  { %1373 = vst.msk [vmem:[%s2439_s6 + $0x8] sm:$0xff] %vm718_vm14, %v1371_v47 }
 0xfd6   :  { %v1502_v30 = vpop.permute.xlu0 %1501 }
 0xfd7   :  { %1504 = vst.msk [vmem:[%s2439_s6 + $0x8] sm:$0xff] %vm585_vm12, %v1502_v30 }
 0xfd8   :  { %1505 = vst.msk [vmem:[%s2440_s7] sm:$0xff] %vm579_vm11, %v1502_v30 }

</bundles_post_ra>
